<compile_context>
chip_gen: v7x
topology: tpu7x:2x2x1
jax: 0.10.0
libtpu: 0.0.40
codegen_flags: <defaults>
</compile_context>

<pallas_src>
import functools

import jax
import jax.numpy as jnp
from jax.experimental import pallas as pl
from jax.experimental.pallas import tpu as pltpu


def _gelu_erf(x):
    # Exact (erf-based) GELU matching torch.nn.GELU(); erf via Abramowitz &
    # Stegun 7.1.26 rational approximation (~1.5e-7 abs err). The divide runs
    # on the EUP via pl.reciprocal(approx=True).
    inv_sqrt2 = 0.7071067811865476
    u = x * inv_sqrt2
    sign = jnp.where(u >= 0.0, 1.0, -1.0)
    a = jnp.abs(u)
    t = pl.reciprocal(1.0 + 0.3275911 * a, approx=True)
    poly = ((((1.061405429 * t - 1.453152027) * t + 1.421413741) * t
             - 0.284496736) * t + 0.254829592) * t
    erf_u = sign * (1.0 - poly * jnp.exp(-a * a))
    return 0.5 * x * (1.0 + erf_u)


def _make_upconv_kernel(H, W, bb, couts):
    """couts: real (unpadded) out-channel count of each of the 4 conv stages."""
    HW = H * W
    eps = 1e-5
    deltas = tuple(dy * W + dx for dy in (-1, 0, 1) for dx in (-1, 0, 1))

    def conv_gn(x, mask, w, b, gamma, beta, cr):
        # x: (Cp, HW) activations (padded rows are exactly zero)
        # mask: (9*Cp, HW) tap validity; w: (Cp, 9*Cp); b/gamma/beta: (Cp, 1)
        cp = x.shape[0]
        # Build the 9 shifted taps (XLU rolls, halo handled by masks) and
        # contract them against the packed weight slab with ONE MXU dot.
        taps = jnp.concatenate(
            [x if d == 0 else pltpu.roll(x, (-d) % HW, 1) for d in deltas],
            axis=0)                                          # (9*Cp, HW)
        taps = taps * mask                                   # zero wrapped lanes
        acc = jnp.dot(w, taps, preferred_element_type=jnp.float32)  # (Cp, HW)

        # Single-pass GroupNorm(2) stats with the conv bias folded in:
        #   sum(y)   = sum(acc) + HW*b
        #   sum(y^2) = sum(acc^2) + 2*b*sum(acc) + HW*b^2
        gsz = cr // 2
        n = float(HW * gsz)
        sa = jnp.sum(acc, axis=1, keepdims=True)             # (Cp, 1)
        sq = jnp.sum(acc * acc, axis=1, keepdims=True)       # (Cp, 1)
        sy = sa + HW * b
        syy = sq + (2.0 * b) * sa + HW * (b * b)
        ch = jax.lax.broadcasted_iota(jnp.int32, (cp, 1), 0)
        in_g0 = ch < gsz
        in_g1 = (ch >= gsz) & (ch < cr)                      # excludes pad channels
        s0 = jnp.sum(jnp.where(in_g0, sy, 0.0), axis=0, keepdims=True)
        s1 = jnp.sum(jnp.where(in_g1, sy, 0.0), axis=0, keepdims=True)
        q0 = jnp.sum(jnp.where(in_g0, syy, 0.0), axis=0, keepdims=True)
        q1 = jnp.sum(jnp.where(in_g1, syy, 0.0), axis=0, keepdims=True)
        mu = jnp.where(in_g0, s0, s1) / n                    # (Cp, 1)
        ey2 = jnp.where(in_g0, q0, q1) / n
        var = jnp.maximum(ey2 - mu * mu, 0.0)
        # Fold bias + affine into one per-channel scale/shift -> single
        # full-plane FMA. Padded channels have gamma=beta=b=0 -> output 0.
        scale = jax.lax.rsqrt(var + eps) * gamma             # (Cp, 1)
        shift = (b - mu) * scale + beta                      # (Cp, 1)
        return acc * scale + shift

    def kernel(mask_ref, x_ref,
               w1, b1, g1, t1, w2, b2, g2, t2,
               w3, b3, g3, t3, w4, b4, g4, t4, o_ref):
        mask = mask_ref[...]   # load once; reused by all convs and all samples
        p1 = (w1[...], b1[...], g1[...], t1[...])
        p2 = (w2[...], b2[...], g2[...], t2[...])
        p3 = (w3[...], b3[...], g3[...], t3[...])
        p4 = (w4[...], b4[...], g4[...], t4[...])
        for s in range(bb):    # bb samples per grid step (amortizes step overhead)
            x0 = x_ref[s]                                    # (Cp, HW)
            # ConvBlock(in, in, residual=True)
            h = _gelu_erf(conv_gn(x0, mask, *p1, couts[0]))
            h = _gelu_erf(x0 + conv_gn(h, mask, *p2, couts[1]))
            # ConvBlock(in, out, residual=False)
            h = _gelu_erf(conv_gn(h, mask, *p3, couts[2]))
            o_ref[s] = _gelu_erf(conv_gn(h, mask, *p4, couts[3]))

    return kernel


def _tap_masks(H, W):
    """(9, H*W) f32 validity masks for the 9 rolled conv taps."""
    r = jnp.arange(H)
    c = jnp.arange(W)
    rows = []
    for dy in (-1, 0, 1):
        for dx in (-1, 0, 1):
            rok = (r + dy >= 0) & (r + dy < H)
            cok = (c + dx >= 0) & (c + dx < W)
            rows.append((rok[:, None] & cok[None, :]).reshape(H * W))
    return jnp.stack(rows).astype(jnp.float32)


@functools.partial(jax.jit, static_argnames=("couts", "cp"))
def upconv_forward(x_nchw, packed, *, couts, cp):
    """x_nchw: (B, Cin, H, W); packed: 4x (w(cp,9cp), b, gamma, beta) padded params."""
    B, cin, H, W = x_nchw.shape
    HW = H * W
    # Lane-dense layout: flatten H*W onto the lane axis; zero-pad channels to cp
    # so every in-kernel tile is (8,128)-aligned.
    x = jnp.zeros((B, cp, HW), jnp.float32).at[:, :cin, :].set(
        x_nchw.reshape(B, cin, HW).astype(jnp.float32))
    mask = jnp.repeat(_tap_masks(H, W), cp, axis=0)          # (9*cp, HW)

    # v7x: two grid steps keep both TensorCores busy; v5e/v6e (single TC): the
    # rest of the batch is folded into each step to amortize per-step overhead.
    grid_b = 2 if (B % 2 == 0 and B >= 2) else B
    bb = B // grid_b

    in_specs = [pl.BlockSpec((9 * cp, HW), lambda g: (0, 0)),
                pl.BlockSpec((bb, cp, HW), lambda g: (g, 0, 0))]
    args = [mask, x]
    for (wq, b, gm, bt) in packed:
        in_specs += [pl.BlockSpec((cp, 9 * cp), lambda g: (0, 0)),
                     pl.BlockSpec((cp, 1), lambda g: (0, 0)),
                     pl.BlockSpec((cp, 1), lambda g: (0, 0)),
                     pl.BlockSpec((cp, 1), lambda g: (0, 0))]
        args += [wq, b, gm, bt]

    out = pl.pallas_call(
        _make_upconv_kernel(H, W, bb, couts),
        out_shape=jax.ShapeDtypeStruct((B, cp, HW), jnp.float32),
        grid=(grid_b,),
        in_specs=in_specs,
        out_specs=pl.BlockSpec((bb, cp, HW), lambda g: (g, 0, 0)),
        compiler_params=pltpu.CompilerParams(
            dimension_semantics=("parallel",)),
    )(*args)
    c_out = couts[-1]
    return out[:, :c_out, :].reshape(B, c_out, H, W)


# ---------------- parameters (torch layout) + repacking for the kernel ----------------

def init_params(key, in_dims, out_dims):
    """Deterministic synthetic params in PyTorch layout: 4x (w(Cout,Cin,3,3), b, gamma, beta)."""
    def conv(k, cin, cout):
        kw, kb = jax.random.split(k)
        w = jax.random.normal(kw, (cout, cin, 3, 3), jnp.float32) * 0.2
        b = jax.random.normal(kb, (cout,), jnp.float32) * 0.1
        return w, b

    def gn(k, c):
        kg, kb = jax.random.split(k)
        gamma = 1.0 + 0.1 * jax.random.normal(kg, (c,), jnp.float32)
        beta = 0.1 * jax.random.normal(kb, (c,), jnp.float32)
        return gamma, beta

    ks = jax.random.split(key, 8)
    return [
        (*conv(ks[0], in_dims, in_dims), *gn(ks[1], in_dims)),    # block1 conv1+GN1
        (*conv(ks[2], in_dims, in_dims), *gn(ks[3], in_dims)),    # block1 conv2+GN2
        (*conv(ks[4], in_dims, out_dims), *gn(ks[5], out_dims)),  # block2 conv1+GN1
        (*conv(ks[6], out_dims, out_dims), *gn(ks[7], out_dims)), # block2 conv2+GN2
    ]


def pack_params(torch_params):
    """Repack torch-layout params into padded kernel layout.

    Returns (packed, couts, cp): weights -> (cp, 9*cp) with
    w_packed[co, k*cp + ci] = w[co, ci, k//3, k%3]; b/gamma/beta -> (cp, 1);
    everything zero-padded to cp = round_up(max channel count, 8) channels
    (gamma/beta/bias pads are 0, so padded channels stay exactly zero).
    """
    couts = tuple(int(w.shape[0]) for (w, _, _, _) in torch_params)
    cins = tuple(int(w.shape[1]) for (w, _, _, _) in torch_params)
    cp = -(-max(couts + cins) // 8) * 8
    packed = []
    for (w, b, gamma, beta) in torch_params:
        co, ci = int(w.shape[0]), int(w.shape[1])
        assert co % 2 == 0, "GroupNorm(2) needs an even channel count"
        wp = jnp.zeros((cp, cp, 3, 3), jnp.float32).at[:co, :ci].set(w)
        wq = jnp.transpose(wp, (0, 2, 3, 1)).reshape(cp, 9 * cp)

        def vec(v):
            return jnp.zeros((cp, 1), jnp.float32).at[:v.shape[0], 0].set(v)

        packed.append((wq, vec(b), vec(gamma), vec(beta)))
    return packed, couts, cp


# ---------------- pure-JAX reference (for correctness validation only) ----------------

def upconv_ref(x, torch_params):
    def conv_gn(h, w, b, gamma, beta):
        y = jax.lax.conv_general_dilated(
            h, w, window_strides=(1, 1), padding=((1, 1), (1, 1)),
            dimension_numbers=("NCHW", "OIHW", "NCHW"),
            precision=jax.lax.Precision.HIGHEST)
        y = y + b[None, :, None, None]
        N, C, Hh, Ww = y.shape
        yg = y.reshape(N, 2, C // 2, Hh, Ww)
        mu = jnp.mean(yg, axis=(2, 3, 4), keepdims=True)
        var = jnp.mean(jnp.square(yg - mu), axis=(2, 3, 4), keepdims=True)
        yn = ((yg - mu) * jax.lax.rsqrt(var + 1e-5)).reshape(N, C, Hh, Ww)
        return yn * gamma[None, :, None, None] + beta[None, :, None, None]

    def block(h, pa, pb, residual):
        y = jax.nn.gelu(conv_gn(h, *pa), approximate=False)
        y = conv_gn(y, *pb)
        if residual:
            y = h + y
        return jax.nn.gelu(y, approximate=False)

    h = block(x, torch_params[0], torch_params[1], residual=True)
    return block(h, torch_params[2], torch_params[3], residual=False)


if __name__ == "__main__":
    in_dims, out_dims = 4, 8
    B, H, W = 2, 16, 16

    key = jax.random.PRNGKey(0)
    kx, kp = jax.random.split(key)
    x = jax.random.normal(kx, (B, in_dims, H, W), jnp.float32)   # NCHW like PyTorch
    torch_params = init_params(kp, in_dims, out_dims)
    packed, couts, cp = pack_params(torch_params)

    out = upconv_forward(x, packed, couts=couts, cp=cp)
    out = jax.block_until_ready(out)
    assert out.shape == (B, out_dims, H, W), out.shape
    assert bool(jnp.all(jnp.isfinite(out)))

    # validate against a pure-JAX reference of the PyTorch module
    ref = upconv_ref(x, torch_params)
    err = float(jnp.max(jnp.abs(out - ref)))
    assert err < 2e-2, f"max abs err vs reference: {err}"

    print("KERNEL_OK")
</pallas_src>

<mosaic_0001>
module attributes {stable_mosaic.version = 11 : i64} {
  func.func @kernel(%arg0: i32, %arg1: memref<72x256xf32, #tpu.memory_space<vmem>>, %arg2: memref<1x8x256xf32, #tpu.memory_space<vmem>>, %arg3: memref<8x72xf32, #tpu.memory_space<vmem>>, %arg4: memref<8x1xf32, #tpu.memory_space<vmem>>, %arg5: memref<8x1xf32, #tpu.memory_space<vmem>>, %arg6: memref<8x1xf32, #tpu.memory_space<vmem>>, %arg7: memref<8x72xf32, #tpu.memory_space<vmem>>, %arg8: memref<8x1xf32, #tpu.memory_space<vmem>>, %arg9: memref<8x1xf32, #tpu.memory_space<vmem>>, %arg10: memref<8x1xf32, #tpu.memory_space<vmem>>, %arg11: memref<8x72xf32, #tpu.memory_space<vmem>>, %arg12: memref<8x1xf32, #tpu.memory_space<vmem>>, %arg13: memref<8x1xf32, #tpu.memory_space<vmem>>, %arg14: memref<8x1xf32, #tpu.memory_space<vmem>>, %arg15: memref<8x72xf32, #tpu.memory_space<vmem>>, %arg16: memref<8x1xf32, #tpu.memory_space<vmem>>, %arg17: memref<8x1xf32, #tpu.memory_space<vmem>>, %arg18: memref<8x1xf32, #tpu.memory_space<vmem>>, %arg19: memref<1x8x256xf32, #tpu.memory_space<vmem>>) attributes {dimension_semantics = [#tpu.dimension_semantics<parallel>], iteration_bounds = array<i64: 2>, scalar_prefetch = 0 : i64, scratch_operands = 0 : i64, tpu.core_type = #tpu.core_type<tc>, window_params = [{pipeline_mode = #tpu.pipeline_mode<synchronous>, transform_indices = @transform_0, window_bounds = array<i64: 72, 256>}, {transform_indices = @transform_1, window_bounds = array<i64: 1, 8, 256>}, {pipeline_mode = #tpu.pipeline_mode<synchronous>, transform_indices = @transform_2, window_bounds = array<i64: 8, 72>}, {pipeline_mode = #tpu.pipeline_mode<synchronous>, transform_indices = @transform_3, window_bounds = array<i64: 8, 1>}, {pipeline_mode = #tpu.pipeline_mode<synchronous>, transform_indices = @transform_4, window_bounds = array<i64: 8, 1>}, {pipeline_mode = #tpu.pipeline_mode<synchronous>, transform_indices = @transform_5, window_bounds = array<i64: 8, 1>}, {pipeline_mode = #tpu.pipeline_mode<synchronous>, transform_indices = @transform_6, window_bounds = array<i64: 8, 72>}, {pipeline_mode = #tpu.pipeline_mode<synchronous>, transform_indices = @transform_7, window_bounds = array<i64: 8, 1>}, {pipeline_mode = #tpu.pipeline_mode<synchronous>, transform_indices = @transform_8, window_bounds = array<i64: 8, 1>}, {pipeline_mode = #tpu.pipeline_mode<synchronous>, transform_indices = @transform_9, window_bounds = array<i64: 8, 1>}, {pipeline_mode = #tpu.pipeline_mode<synchronous>, transform_indices = @transform_10, window_bounds = array<i64: 8, 72>}, {pipeline_mode = #tpu.pipeline_mode<synchronous>, transform_indices = @transform_11, window_bounds = array<i64: 8, 1>}, {pipeline_mode = #tpu.pipeline_mode<synchronous>, transform_indices = @transform_12, window_bounds = array<i64: 8, 1>}, {pipeline_mode = #tpu.pipeline_mode<synchronous>, transform_indices = @transform_13, window_bounds = array<i64: 8, 1>}, {pipeline_mode = #tpu.pipeline_mode<synchronous>, transform_indices = @transform_14, window_bounds = array<i64: 8, 72>}, {pipeline_mode = #tpu.pipeline_mode<synchronous>, transform_indices = @transform_15, window_bounds = array<i64: 8, 1>}, {pipeline_mode = #tpu.pipeline_mode<synchronous>, transform_indices = @transform_16, window_bounds = array<i64: 8, 1>}, {pipeline_mode = #tpu.pipeline_mode<synchronous>, transform_indices = @transform_17, window_bounds = array<i64: 8, 1>}, {transform_indices = @transform_18, window_bounds = array<i64: 1, 8, 256>}]} {
    %c0 = arith.constant 0 : index
    %c0_0 = arith.constant 0 : index
    %0 = vector.load %arg1[%c0, %c0_0] : memref<72x256xf32, #tpu.memory_space<vmem>>, vector<72x256xf32>
    %c0_1 = arith.constant 0 : index
    %c0_2 = arith.constant 0 : index
    %1 = vector.load %arg3[%c0_1, %c0_2] : memref<8x72xf32, #tpu.memory_space<vmem>>, vector<8x72xf32>
    %c0_3 = arith.constant 0 : index
    %c0_4 = arith.constant 0 : index
    %2 = vector.load %arg4[%c0_3, %c0_4] : memref<8x1xf32, #tpu.memory_space<vmem>>, vector<8x1xf32>
    %c0_5 = arith.constant 0 : index
    %c0_6 = arith.constant 0 : index
    %3 = vector.load %arg5[%c0_5, %c0_6] : memref<8x1xf32, #tpu.memory_space<vmem>>, vector<8x1xf32>
    %c0_7 = arith.constant 0 : index
    %c0_8 = arith.constant 0 : index
    %4 = vector.load %arg6[%c0_7, %c0_8] : memref<8x1xf32, #tpu.memory_space<vmem>>, vector<8x1xf32>
    %c0_9 = arith.constant 0 : index
    %c0_10 = arith.constant 0 : index
    %5 = vector.load %arg7[%c0_9, %c0_10] : memref<8x72xf32, #tpu.memory_space<vmem>>, vector<8x72xf32>
    %c0_11 = arith.constant 0 : index
    %c0_12 = arith.constant 0 : index
    %6 = vector.load %arg8[%c0_11, %c0_12] : memref<8x1xf32, #tpu.memory_space<vmem>>, vector<8x1xf32>
    %c0_13 = arith.constant 0 : index
    %c0_14 = arith.constant 0 : index
    %7 = vector.load %arg9[%c0_13, %c0_14] : memref<8x1xf32, #tpu.memory_space<vmem>>, vector<8x1xf32>
    %c0_15 = arith.constant 0 : index
    %c0_16 = arith.constant 0 : index
    %8 = vector.load %arg10[%c0_15, %c0_16] : memref<8x1xf32, #tpu.memory_space<vmem>>, vector<8x1xf32>
    %c0_17 = arith.constant 0 : index
    %c0_18 = arith.constant 0 : index
    %9 = vector.load %arg11[%c0_17, %c0_18] : memref<8x72xf32, #tpu.memory_space<vmem>>, vector<8x72xf32>
    %c0_19 = arith.constant 0 : index
    %c0_20 = arith.constant 0 : index
    %10 = vector.load %arg12[%c0_19, %c0_20] : memref<8x1xf32, #tpu.memory_space<vmem>>, vector<8x1xf32>
    %c0_21 = arith.constant 0 : index
    %c0_22 = arith.constant 0 : index
    %11 = vector.load %arg13[%c0_21, %c0_22] : memref<8x1xf32, #tpu.memory_space<vmem>>, vector<8x1xf32>
    %c0_23 = arith.constant 0 : index
    %c0_24 = arith.constant 0 : index
    %12 = vector.load %arg14[%c0_23, %c0_24] : memref<8x1xf32, #tpu.memory_space<vmem>>, vector<8x1xf32>
    %c0_25 = arith.constant 0 : index
    %c0_26 = arith.constant 0 : index
    %13 = vector.load %arg15[%c0_25, %c0_26] : memref<8x72xf32, #tpu.memory_space<vmem>>, vector<8x72xf32>
    %c0_27 = arith.constant 0 : index
    %c0_28 = arith.constant 0 : index
    %14 = vector.load %arg16[%c0_27, %c0_28] : memref<8x1xf32, #tpu.memory_space<vmem>>, vector<8x1xf32>
    %c0_29 = arith.constant 0 : index
    %c0_30 = arith.constant 0 : index
    %15 = vector.load %arg17[%c0_29, %c0_30] : memref<8x1xf32, #tpu.memory_space<vmem>>, vector<8x1xf32>
    %c0_31 = arith.constant 0 : index
    %c0_32 = arith.constant 0 : index
    %16 = vector.load %arg18[%c0_31, %c0_32] : memref<8x1xf32, #tpu.memory_space<vmem>>, vector<8x1xf32>
    %c0_33 = arith.constant 0 : index
    %c0_34 = arith.constant 0 : index
    %c0_35 = arith.constant 0 : index
    %17 = vector.load %arg2[%c0_33, %c0_34, %c0_35] : memref<1x8x256xf32, #tpu.memory_space<vmem>>, vector<1x8x256xf32>
    %18 = vector.shape_cast %17 : vector<1x8x256xf32> to vector<8x256xf32>
    %c17_i32 = arith.constant 17 : i32
    %19 = tpu.dynamic_rotate %18 by %c17_i32 dim 1 : vector<8x256xf32>, i32 -> vector<8x256xf32>
    %c16_i32 = arith.constant 16 : i32
    %20 = tpu.dynamic_rotate %18 by %c16_i32 dim 1 : vector<8x256xf32>, i32 -> vector<8x256xf32>
    %c15_i32 = arith.constant 15 : i32
    %21 = tpu.dynamic_rotate %18 by %c15_i32 dim 1 : vector<8x256xf32>, i32 -> vector<8x256xf32>
    %c1_i32 = arith.constant 1 : i32
    %22 = tpu.dynamic_rotate %18 by %c1_i32 dim 1 : vector<8x256xf32>, i32 -> vector<8x256xf32>
    %c255_i32 = arith.constant 255 : i32
    %23 = tpu.dynamic_rotate %18 by %c255_i32 dim 1 : vector<8x256xf32>, i32 -> vector<8x256xf32>
    %c241_i32 = arith.constant 241 : i32
    %24 = tpu.dynamic_rotate %18 by %c241_i32 dim 1 : vector<8x256xf32>, i32 -> vector<8x256xf32>
    %c240_i32 = arith.constant 240 : i32
    %25 = tpu.dynamic_rotate %18 by %c240_i32 dim 1 : vector<8x256xf32>, i32 -> vector<8x256xf32>
    %c239_i32 = arith.constant 239 : i32
    %26 = tpu.dynamic_rotate %18 by %c239_i32 dim 1 : vector<8x256xf32>, i32 -> vector<8x256xf32>
    %27 = tpu.concatenate %19, %20, %21, %22, %18, %23, %24, %25, %26 in 0 : vector<8x256xf32>, vector<8x256xf32>, vector<8x256xf32>, vector<8x256xf32>, vector<8x256xf32>, vector<8x256xf32>, vector<8x256xf32>, vector<8x256xf32>, vector<8x256xf32> -> vector<72x256xf32>
    %28 = arith.mulf %27, %0 : vector<72x256xf32>
    %cst = arith.constant dense<0.000000e+00> : vector<8x256xf32>
    %29 = tpu.matmul %1, %28, %cst {dimension_numbers = #tpu.dot_dimension_numbers<[1], [0], [0], [1], [0, 0, 1, 1], [], []>} : vector<8x72xf32>, vector<72x256xf32>, vector<8x256xf32> -> vector<8x256xf32>
    %cst_36 = arith.constant dense<0.000000e+00> : vector<8xf32>
    %30 = vector.multi_reduction <add>, %29, %cst_36 [1] : vector<8x256xf32> to vector<8xf32>
    %31 = vector.shape_cast %30 : vector<8xf32> to vector<8x1xf32>
    %32 = arith.mulf %29, %29 : vector<8x256xf32>
    %cst_37 = arith.constant dense<0.000000e+00> : vector<8xf32>
    %33 = vector.multi_reduction <add>, %32, %cst_37 [1] : vector<8x256xf32> to vector<8xf32>
    %34 = vector.shape_cast %33 : vector<8xf32> to vector<8x1xf32>
    %cst_38 = arith.constant 2.560000e+02 : f32
    %35 = vector.broadcast %cst_38 : f32 to vector<8x1xf32>
    %36 = arith.mulf %35, %2 : vector<8x1xf32>
    %37 = arith.addf %31, %36 : vector<8x1xf32>
    %cst_39 = arith.constant 2.000000e+00 : f32
    %38 = vector.broadcast %cst_39 : f32 to vector<8x1xf32>
    %39 = arith.mulf %38, %2 : vector<8x1xf32>
    %40 = arith.mulf %39, %31 : vector<8x1xf32>
    %41 = arith.addf %34, %40 : vector<8x1xf32>
    %42 = arith.mulf %2, %2 : vector<8x1xf32>
    %cst_40 = arith.constant 2.560000e+02 : f32
    %43 = vector.broadcast %cst_40 : f32 to vector<8x1xf32>
    %44 = arith.mulf %43, %42 : vector<8x1xf32>
    %45 = arith.addf %41, %44 : vector<8x1xf32>
    %46 = tpu.iota {dimensions = array<i32: 0>} : vector<8x1xi32>
    %c2_i32 = arith.constant 2 : i32
    %47 = vector.broadcast %c2_i32 : i32 to vector<8x1xi32>
    %48 = arith.cmpi slt, %46, %47 : vector<8x1xi32>
    %c2_i32_41 = arith.constant 2 : i32
    %49 = vector.broadcast %c2_i32_41 : i32 to vector<8x1xi32>
    %50 = arith.cmpi sge, %46, %49 : vector<8x1xi32>
    %c4_i32 = arith.constant 4 : i32
    %51 = vector.broadcast %c4_i32 : i32 to vector<8x1xi32>
    %52 = arith.cmpi slt, %46, %51 : vector<8x1xi32>
    %53 = arith.andi %50, %52 : vector<8x1xi1>
    %cst_42 = arith.constant 0.000000e+00 : f32
    %54 = vector.broadcast %cst_42 : f32 to vector<8x1xf32>
    %55 = arith.select %48, %37, %54 : vector<8x1xi1>, vector<8x1xf32>
    %cst_43 = arith.constant dense<0.000000e+00> : vector<1xf32>
    %56 = vector.multi_reduction <add>, %55, %cst_43 [0] : vector<8x1xf32> to vector<1xf32>
    %57 = vector.shape_cast %56 : vector<1xf32> to vector<1x1xf32>
    %cst_44 = arith.constant 0.000000e+00 : f32
    %58 = vector.broadcast %cst_44 : f32 to vector<8x1xf32>
    %59 = arith.select %53, %37, %58 : vector<8x1xi1>, vector<8x1xf32>
    %cst_45 = arith.constant dense<0.000000e+00> : vector<1xf32>
    %60 = vector.multi_reduction <add>, %59, %cst_45 [0] : vector<8x1xf32> to vector<1xf32>
    %61 = vector.shape_cast %60 : vector<1xf32> to vector<1x1xf32>
    %cst_46 = arith.constant 0.000000e+00 : f32
    %62 = vector.broadcast %cst_46 : f32 to vector<8x1xf32>
    %63 = arith.select %48, %45, %62 : vector<8x1xi1>, vector<8x1xf32>
    %cst_47 = arith.constant dense<0.000000e+00> : vector<1xf32>
    %64 = vector.multi_reduction <add>, %63, %cst_47 [0] : vector<8x1xf32> to vector<1xf32>
    %65 = vector.shape_cast %64 : vector<1xf32> to vector<1x1xf32>
    %cst_48 = arith.constant 0.000000e+00 : f32
    %66 = vector.broadcast %cst_48 : f32 to vector<8x1xf32>
    %67 = arith.select %53, %45, %66 : vector<8x1xi1>, vector<8x1xf32>
    %cst_49 = arith.constant dense<0.000000e+00> : vector<1xf32>
    %68 = vector.multi_reduction <add>, %67, %cst_49 [0] : vector<8x1xf32> to vector<1xf32>
    %69 = vector.shape_cast %68 : vector<1xf32> to vector<1x1xf32>
    %70 = vector.shape_cast %57 : vector<1x1xf32> to vector<1x1xf32>
    %71 = vector.broadcast %70 : vector<1x1xf32> to vector<8x1xf32>
    %72 = vector.shape_cast %61 : vector<1x1xf32> to vector<1x1xf32>
    %73 = vector.broadcast %72 : vector<1x1xf32> to vector<8x1xf32>
    %74 = arith.select %48, %71, %73 : vector<8x1xi1>, vector<8x1xf32>
    %cst_50 = arith.constant 5.120000e+02 : f32
    %75 = vector.broadcast %cst_50 : f32 to vector<8x1xf32>
    %76 = arith.divf %74, %75 : vector<8x1xf32>
    %77 = vector.shape_cast %65 : vector<1x1xf32> to vector<1x1xf32>
    %78 = vector.broadcast %77 : vector<1x1xf32> to vector<8x1xf32>
    %79 = vector.shape_cast %69 : vector<1x1xf32> to vector<1x1xf32>
    %80 = vector.broadcast %79 : vector<1x1xf32> to vector<8x1xf32>
    %81 = arith.select %48, %78, %80 : vector<8x1xi1>, vector<8x1xf32>
    %cst_51 = arith.constant 5.120000e+02 : f32
    %82 = vector.broadcast %cst_51 : f32 to vector<8x1xf32>
    %83 = arith.divf %81, %82 : vector<8x1xf32>
    %84 = arith.mulf %76, %76 : vector<8x1xf32>
    %85 = arith.subf %83, %84 : vector<8x1xf32>
    %cst_52 = arith.constant 0.000000e+00 : f32
    %86 = vector.broadcast %cst_52 : f32 to vector<8x1xf32>
    %87 = arith.maximumf %85, %86 : vector<8x1xf32>
    %cst_53 = arith.constant 9.99999974E-6 : f32
    %88 = vector.broadcast %cst_53 : f32 to vector<8x1xf32>
    %89 = arith.addf %87, %88 : vector<8x1xf32>
    %90 = math.rsqrt %89 : vector<8x1xf32>
    %91 = arith.mulf %90, %3 : vector<8x1xf32>
    %92 = arith.subf %2, %76 : vector<8x1xf32>
    %93 = arith.mulf %92, %91 : vector<8x1xf32>
    %94 = arith.addf %93, %4 : vector<8x1xf32>
    %95 = vector.broadcast %91 : vector<8x1xf32> to vector<8x256xf32>
    %96 = arith.mulf %29, %95 : vector<8x256xf32>
    %97 = vector.broadcast %94 : vector<8x1xf32> to vector<8x256xf32>
    %98 = arith.addf %96, %97 : vector<8x256xf32>
    %cst_54 = arith.constant 0.707106769 : f32
    %99 = vector.broadcast %cst_54 : f32 to vector<8x256xf32>
    %100 = arith.mulf %98, %99 : vector<8x256xf32>
    %cst_55 = arith.constant 0.000000e+00 : f32
    %101 = vector.broadcast %cst_55 : f32 to vector<8x256xf32>
    %102 = arith.cmpf oge, %100, %101 : vector<8x256xf32>
    %cst_56 = arith.constant 1.000000e+00 : f32
    %cst_57 = arith.constant -1.000000e+00 : f32
    %103 = vector.broadcast %cst_56 : f32 to vector<8x256xf32>
    %104 = vector.broadcast %cst_57 : f32 to vector<8x256xf32>
    %105 = arith.select %102, %103, %104 : vector<8x256xi1>, vector<8x256xf32>
    %106 = math.absf %100 : vector<8x256xf32>
    %cst_58 = arith.constant 0.327591091 : f32
    %107 = vector.broadcast %cst_58 : f32 to vector<8x256xf32>
    %108 = arith.mulf %107, %106 : vector<8x256xf32>
    %cst_59 = arith.constant 1.000000e+00 : f32
    %109 = vector.broadcast %cst_59 : f32 to vector<8x256xf32>
    %110 = arith.addf %109, %108 : vector<8x256xf32>
    %111 = tpu.reciprocal %110 {approx = true} : vector<8x256xf32> -> vector<8x256xf32>
    %cst_60 = arith.constant 1.06140542 : f32
    %112 = vector.broadcast %cst_60 : f32 to vector<8x256xf32>
    %113 = arith.mulf %112, %111 : vector<8x256xf32>
    %cst_61 = arith.constant 1.45315206 : f32
    %114 = vector.broadcast %cst_61 : f32 to vector<8x256xf32>
    %115 = arith.subf %113, %114 : vector<8x256xf32>
    %116 = arith.mulf %115, %111 : vector<8x256xf32>
    %cst_62 = arith.constant 1.42141378 : f32
    %117 = vector.broadcast %cst_62 : f32 to vector<8x256xf32>
    %118 = arith.addf %116, %117 : vector<8x256xf32>
    %119 = arith.mulf %118, %111 : vector<8x256xf32>
    %cst_63 = arith.constant 0.284496725 : f32
    %120 = vector.broadcast %cst_63 : f32 to vector<8x256xf32>
    %121 = arith.subf %119, %120 : vector<8x256xf32>
    %122 = arith.mulf %121, %111 : vector<8x256xf32>
    %cst_64 = arith.constant 0.254829586 : f32
    %123 = vector.broadcast %cst_64 : f32 to vector<8x256xf32>
    %124 = arith.addf %122, %123 : vector<8x256xf32>
    %125 = arith.mulf %124, %111 : vector<8x256xf32>
    %cst_65 = arith.constant 0.000000e+00 : f32
    %126 = vector.broadcast %cst_65 : f32 to vector<8x256xf32>
    %127 = arith.subf %126, %106 : vector<8x256xf32>
    %128 = arith.mulf %127, %106 : vector<8x256xf32>
    %129 = math.exp %128 : vector<8x256xf32>
    %130 = arith.mulf %125, %129 : vector<8x256xf32>
    %cst_66 = arith.constant 1.000000e+00 : f32
    %131 = vector.broadcast %cst_66 : f32 to vector<8x256xf32>
    %132 = arith.subf %131, %130 : vector<8x256xf32>
    %133 = arith.mulf %105, %132 : vector<8x256xf32>
    %cst_67 = arith.constant 5.000000e-01 : f32
    %134 = vector.broadcast %cst_67 : f32 to vector<8x256xf32>
    %135 = arith.mulf %134, %98 : vector<8x256xf32>
    %cst_68 = arith.constant 1.000000e+00 : f32
    %136 = vector.broadcast %cst_68 : f32 to vector<8x256xf32>
    %137 = arith.addf %136, %133 : vector<8x256xf32>
    %138 = arith.mulf %135, %137 : vector<8x256xf32>
    %c17_i32_69 = arith.constant 17 : i32
    %139 = tpu.dynamic_rotate %138 by %c17_i32_69 dim 1 : vector<8x256xf32>, i32 -> vector<8x256xf32>
    %c16_i32_70 = arith.constant 16 : i32
    %140 = tpu.dynamic_rotate %138 by %c16_i32_70 dim 1 : vector<8x256xf32>, i32 -> vector<8x256xf32>
    %c15_i32_71 = arith.constant 15 : i32
    %141 = tpu.dynamic_rotate %138 by %c15_i32_71 dim 1 : vector<8x256xf32>, i32 -> vector<8x256xf32>
    %c1_i32_72 = arith.constant 1 : i32
    %142 = tpu.dynamic_rotate %138 by %c1_i32_72 dim 1 : vector<8x256xf32>, i32 -> vector<8x256xf32>
    %c255_i32_73 = arith.constant 255 : i32
    %143 = tpu.dynamic_rotate %138 by %c255_i32_73 dim 1 : vector<8x256xf32>, i32 -> vector<8x256xf32>
    %c241_i32_74 = arith.constant 241 : i32
    %144 = tpu.dynamic_rotate %138 by %c241_i32_74 dim 1 : vector<8x256xf32>, i32 -> vector<8x256xf32>
    %c240_i32_75 = arith.constant 240 : i32
    %145 = tpu.dynamic_rotate %138 by %c240_i32_75 dim 1 : vector<8x256xf32>, i32 -> vector<8x256xf32>
    %c239_i32_76 = arith.constant 239 : i32
    %146 = tpu.dynamic_rotate %138 by %c239_i32_76 dim 1 : vector<8x256xf32>, i32 -> vector<8x256xf32>
    %147 = tpu.concatenate %139, %140, %141, %142, %138, %143, %144, %145, %146 in 0 : vector<8x256xf32>, vector<8x256xf32>, vector<8x256xf32>, vector<8x256xf32>, vector<8x256xf32>, vector<8x256xf32>, vector<8x256xf32>, vector<8x256xf32>, vector<8x256xf32> -> vector<72x256xf32>
    %148 = arith.mulf %147, %0 : vector<72x256xf32>
    %cst_77 = arith.constant dense<0.000000e+00> : vector<8x256xf32>
    %149 = tpu.matmul %5, %148, %cst_77 {dimension_numbers = #tpu.dot_dimension_numbers<[1], [0], [0], [1], [0, 0, 1, 1], [], []>} : vector<8x72xf32>, vector<72x256xf32>, vector<8x256xf32> -> vector<8x256xf32>
    %cst_78 = arith.constant dense<0.000000e+00> : vector<8xf32>
    %150 = vector.multi_reduction <add>, %149, %cst_78 [1] : vector<8x256xf32> to vector<8xf32>
    %151 = vector.shape_cast %150 : vector<8xf32> to vector<8x1xf32>
    %152 = arith.mulf %149, %149 : vector<8x256xf32>
    %cst_79 = arith.constant dense<0.000000e+00> : vector<8xf32>
    %153 = vector.multi_reduction <add>, %152, %cst_79 [1] : vector<8x256xf32> to vector<8xf32>
    %154 = vector.shape_cast %153 : vector<8xf32> to vector<8x1xf32>
    %cst_80 = arith.constant 2.560000e+02 : f32
    %155 = vector.broadcast %cst_80 : f32 to vector<8x1xf32>
    %156 = arith.mulf %155, %6 : vector<8x1xf32>
    %157 = arith.addf %151, %156 : vector<8x1xf32>
    %cst_81 = arith.constant 2.000000e+00 : f32
    %158 = vector.broadcast %cst_81 : f32 to vector<8x1xf32>
    %159 = arith.mulf %158, %6 : vector<8x1xf32>
    %160 = arith.mulf %159, %151 : vector<8x1xf32>
    %161 = arith.addf %154, %160 : vector<8x1xf32>
    %162 = arith.mulf %6, %6 : vector<8x1xf32>
    %cst_82 = arith.constant 2.560000e+02 : f32
    %163 = vector.broadcast %cst_82 : f32 to vector<8x1xf32>
    %164 = arith.mulf %163, %162 : vector<8x1xf32>
    %165 = arith.addf %161, %164 : vector<8x1xf32>
    %166 = tpu.iota {dimensions = array<i32: 0>} : vector<8x1xi32>
    %c2_i32_83 = arith.constant 2 : i32
    %167 = vector.broadcast %c2_i32_83 : i32 to vector<8x1xi32>
    %168 = arith.cmpi slt, %166, %167 : vector<8x1xi32>
    %c2_i32_84 = arith.constant 2 : i32
    %169 = vector.broadcast %c2_i32_84 : i32 to vector<8x1xi32>
    %170 = arith.cmpi sge, %166, %169 : vector<8x1xi32>
    %c4_i32_85 = arith.constant 4 : i32
    %171 = vector.broadcast %c4_i32_85 : i32 to vector<8x1xi32>
    %172 = arith.cmpi slt, %166, %171 : vector<8x1xi32>
    %173 = arith.andi %170, %172 : vector<8x1xi1>
    %cst_86 = arith.constant 0.000000e+00 : f32
    %174 = vector.broadcast %cst_86 : f32 to vector<8x1xf32>
    %175 = arith.select %168, %157, %174 : vector<8x1xi1>, vector<8x1xf32>
    %cst_87 = arith.constant dense<0.000000e+00> : vector<1xf32>
    %176 = vector.multi_reduction <add>, %175, %cst_87 [0] : vector<8x1xf32> to vector<1xf32>
    %177 = vector.shape_cast %176 : vector<1xf32> to vector<1x1xf32>
    %cst_88 = arith.constant 0.000000e+00 : f32
    %178 = vector.broadcast %cst_88 : f32 to vector<8x1xf32>
    %179 = arith.select %173, %157, %178 : vector<8x1xi1>, vector<8x1xf32>
    %cst_89 = arith.constant dense<0.000000e+00> : vector<1xf32>
    %180 = vector.multi_reduction <add>, %179, %cst_89 [0] : vector<8x1xf32> to vector<1xf32>
    %181 = vector.shape_cast %180 : vector<1xf32> to vector<1x1xf32>
    %cst_90 = arith.constant 0.000000e+00 : f32
    %182 = vector.broadcast %cst_90 : f32 to vector<8x1xf32>
    %183 = arith.select %168, %165, %182 : vector<8x1xi1>, vector<8x1xf32>
    %cst_91 = arith.constant dense<0.000000e+00> : vector<1xf32>
    %184 = vector.multi_reduction <add>, %183, %cst_91 [0] : vector<8x1xf32> to vector<1xf32>
    %185 = vector.shape_cast %184 : vector<1xf32> to vector<1x1xf32>
    %cst_92 = arith.constant 0.000000e+00 : f32
    %186 = vector.broadcast %cst_92 : f32 to vector<8x1xf32>
    %187 = arith.select %173, %165, %186 : vector<8x1xi1>, vector<8x1xf32>
    %cst_93 = arith.constant dense<0.000000e+00> : vector<1xf32>
    %188 = vector.multi_reduction <add>, %187, %cst_93 [0] : vector<8x1xf32> to vector<1xf32>
    %189 = vector.shape_cast %188 : vector<1xf32> to vector<1x1xf32>
    %190 = vector.shape_cast %177 : vector<1x1xf32> to vector<1x1xf32>
    %191 = vector.broadcast %190 : vector<1x1xf32> to vector<8x1xf32>
    %192 = vector.shape_cast %181 : vector<1x1xf32> to vector<1x1xf32>
    %193 = vector.broadcast %192 : vector<1x1xf32> to vector<8x1xf32>
    %194 = arith.select %168, %191, %193 : vector<8x1xi1>, vector<8x1xf32>
    %cst_94 = arith.constant 5.120000e+02 : f32
    %195 = vector.broadcast %cst_94 : f32 to vector<8x1xf32>
    %196 = arith.divf %194, %195 : vector<8x1xf32>
    %197 = vector.shape_cast %185 : vector<1x1xf32> to vector<1x1xf32>
    %198 = vector.broadcast %197 : vector<1x1xf32> to vector<8x1xf32>
    %199 = vector.shape_cast %189 : vector<1x1xf32> to vector<1x1xf32>
    %200 = vector.broadcast %199 : vector<1x1xf32> to vector<8x1xf32>
    %201 = arith.select %168, %198, %200 : vector<8x1xi1>, vector<8x1xf32>
    %cst_95 = arith.constant 5.120000e+02 : f32
    %202 = vector.broadcast %cst_95 : f32 to vector<8x1xf32>
    %203 = arith.divf %201, %202 : vector<8x1xf32>
    %204 = arith.mulf %196, %196 : vector<8x1xf32>
    %205 = arith.subf %203, %204 : vector<8x1xf32>
    %cst_96 = arith.constant 0.000000e+00 : f32
    %206 = vector.broadcast %cst_96 : f32 to vector<8x1xf32>
    %207 = arith.maximumf %205, %206 : vector<8x1xf32>
    %cst_97 = arith.constant 9.99999974E-6 : f32
    %208 = vector.broadcast %cst_97 : f32 to vector<8x1xf32>
    %209 = arith.addf %207, %208 : vector<8x1xf32>
    %210 = math.rsqrt %209 : vector<8x1xf32>
    %211 = arith.mulf %210, %7 : vector<8x1xf32>
    %212 = arith.subf %6, %196 : vector<8x1xf32>
    %213 = arith.mulf %212, %211 : vector<8x1xf32>
    %214 = arith.addf %213, %8 : vector<8x1xf32>
    %215 = vector.broadcast %211 : vector<8x1xf32> to vector<8x256xf32>
    %216 = arith.mulf %149, %215 : vector<8x256xf32>
    %217 = vector.broadcast %214 : vector<8x1xf32> to vector<8x256xf32>
    %218 = arith.addf %216, %217 : vector<8x256xf32>
    %219 = arith.addf %18, %218 : vector<8x256xf32>
    %cst_98 = arith.constant 0.707106769 : f32
    %220 = vector.broadcast %cst_98 : f32 to vector<8x256xf32>
    %221 = arith.mulf %219, %220 : vector<8x256xf32>
    %cst_99 = arith.constant 0.000000e+00 : f32
    %222 = vector.broadcast %cst_99 : f32 to vector<8x256xf32>
    %223 = arith.cmpf oge, %221, %222 : vector<8x256xf32>
    %cst_100 = arith.constant 1.000000e+00 : f32
    %cst_101 = arith.constant -1.000000e+00 : f32
    %224 = vector.broadcast %cst_100 : f32 to vector<8x256xf32>
    %225 = vector.broadcast %cst_101 : f32 to vector<8x256xf32>
    %226 = arith.select %223, %224, %225 : vector<8x256xi1>, vector<8x256xf32>
    %227 = math.absf %221 : vector<8x256xf32>
    %cst_102 = arith.constant 0.327591091 : f32
    %228 = vector.broadcast %cst_102 : f32 to vector<8x256xf32>
    %229 = arith.mulf %228, %227 : vector<8x256xf32>
    %cst_103 = arith.constant 1.000000e+00 : f32
    %230 = vector.broadcast %cst_103 : f32 to vector<8x256xf32>
    %231 = arith.addf %230, %229 : vector<8x256xf32>
    %232 = tpu.reciprocal %231 {approx = true} : vector<8x256xf32> -> vector<8x256xf32>
    %cst_104 = arith.constant 1.06140542 : f32
    %233 = vector.broadcast %cst_104 : f32 to vector<8x256xf32>
    %234 = arith.mulf %233, %232 : vector<8x256xf32>
    %cst_105 = arith.constant 1.45315206 : f32
    %235 = vector.broadcast %cst_105 : f32 to vector<8x256xf32>
    %236 = arith.subf %234, %235 : vector<8x256xf32>
    %237 = arith.mulf %236, %232 : vector<8x256xf32>
    %cst_106 = arith.constant 1.42141378 : f32
    %238 = vector.broadcast %cst_106 : f32 to vector<8x256xf32>
    %239 = arith.addf %237, %238 : vector<8x256xf32>
    %240 = arith.mulf %239, %232 : vector<8x256xf32>
    %cst_107 = arith.constant 0.284496725 : f32
    %241 = vector.broadcast %cst_107 : f32 to vector<8x256xf32>
    %242 = arith.subf %240, %241 : vector<8x256xf32>
    %243 = arith.mulf %242, %232 : vector<8x256xf32>
    %cst_108 = arith.constant 0.254829586 : f32
    %244 = vector.broadcast %cst_108 : f32 to vector<8x256xf32>
    %245 = arith.addf %243, %244 : vector<8x256xf32>
    %246 = arith.mulf %245, %232 : vector<8x256xf32>
    %cst_109 = arith.constant 0.000000e+00 : f32
    %247 = vector.broadcast %cst_109 : f32 to vector<8x256xf32>
    %248 = arith.subf %247, %227 : vector<8x256xf32>
    %249 = arith.mulf %248, %227 : vector<8x256xf32>
    %250 = math.exp %249 : vector<8x256xf32>
    %251 = arith.mulf %246, %250 : vector<8x256xf32>
    %cst_110 = arith.constant 1.000000e+00 : f32
    %252 = vector.broadcast %cst_110 : f32 to vector<8x256xf32>
    %253 = arith.subf %252, %251 : vector<8x256xf32>
    %254 = arith.mulf %226, %253 : vector<8x256xf32>
    %cst_111 = arith.constant 5.000000e-01 : f32
    %255 = vector.broadcast %cst_111 : f32 to vector<8x256xf32>
    %256 = arith.mulf %255, %219 : vector<8x256xf32>
    %cst_112 = arith.constant 1.000000e+00 : f32
    %257 = vector.broadcast %cst_112 : f32 to vector<8x256xf32>
    %258 = arith.addf %257, %254 : vector<8x256xf32>
    %259 = arith.mulf %256, %258 : vector<8x256xf32>
    %c17_i32_113 = arith.constant 17 : i32
    %260 = tpu.dynamic_rotate %259 by %c17_i32_113 dim 1 : vector<8x256xf32>, i32 -> vector<8x256xf32>
    %c16_i32_114 = arith.constant 16 : i32
    %261 = tpu.dynamic_rotate %259 by %c16_i32_114 dim 1 : vector<8x256xf32>, i32 -> vector<8x256xf32>
    %c15_i32_115 = arith.constant 15 : i32
    %262 = tpu.dynamic_rotate %259 by %c15_i32_115 dim 1 : vector<8x256xf32>, i32 -> vector<8x256xf32>
    %c1_i32_116 = arith.constant 1 : i32
    %263 = tpu.dynamic_rotate %259 by %c1_i32_116 dim 1 : vector<8x256xf32>, i32 -> vector<8x256xf32>
    %c255_i32_117 = arith.constant 255 : i32
    %264 = tpu.dynamic_rotate %259 by %c255_i32_117 dim 1 : vector<8x256xf32>, i32 -> vector<8x256xf32>
    %c241_i32_118 = arith.constant 241 : i32
    %265 = tpu.dynamic_rotate %259 by %c241_i32_118 dim 1 : vector<8x256xf32>, i32 -> vector<8x256xf32>
    %c240_i32_119 = arith.constant 240 : i32
    %266 = tpu.dynamic_rotate %259 by %c240_i32_119 dim 1 : vector<8x256xf32>, i32 -> vector<8x256xf32>
    %c239_i32_120 = arith.constant 239 : i32
    %267 = tpu.dynamic_rotate %259 by %c239_i32_120 dim 1 : vector<8x256xf32>, i32 -> vector<8x256xf32>
    %268 = tpu.concatenate %260, %261, %262, %263, %259, %264, %265, %266, %267 in 0 : vector<8x256xf32>, vector<8x256xf32>, vector<8x256xf32>, vector<8x256xf32>, vector<8x256xf32>, vector<8x256xf32>, vector<8x256xf32>, vector<8x256xf32>, vector<8x256xf32> -> vector<72x256xf32>
    %269 = arith.mulf %268, %0 : vector<72x256xf32>
    %cst_121 = arith.constant dense<0.000000e+00> : vector<8x256xf32>
    %270 = tpu.matmul %9, %269, %cst_121 {dimension_numbers = #tpu.dot_dimension_numbers<[1], [0], [0], [1], [0, 0, 1, 1], [], []>} : vector<8x72xf32>, vector<72x256xf32>, vector<8x256xf32> -> vector<8x256xf32>
    %cst_122 = arith.constant dense<0.000000e+00> : vector<8xf32>
    %271 = vector.multi_reduction <add>, %270, %cst_122 [1] : vector<8x256xf32> to vector<8xf32>
    %272 = vector.shape_cast %271 : vector<8xf32> to vector<8x1xf32>
    %273 = arith.mulf %270, %270 : vector<8x256xf32>
    %cst_123 = arith.constant dense<0.000000e+00> : vector<8xf32>
    %274 = vector.multi_reduction <add>, %273, %cst_123 [1] : vector<8x256xf32> to vector<8xf32>
    %275 = vector.shape_cast %274 : vector<8xf32> to vector<8x1xf32>
    %cst_124 = arith.constant 2.560000e+02 : f32
    %276 = vector.broadcast %cst_124 : f32 to vector<8x1xf32>
    %277 = arith.mulf %276, %10 : vector<8x1xf32>
    %278 = arith.addf %272, %277 : vector<8x1xf32>
    %cst_125 = arith.constant 2.000000e+00 : f32
    %279 = vector.broadcast %cst_125 : f32 to vector<8x1xf32>
    %280 = arith.mulf %279, %10 : vector<8x1xf32>
    %281 = arith.mulf %280, %272 : vector<8x1xf32>
    %282 = arith.addf %275, %281 : vector<8x1xf32>
    %283 = arith.mulf %10, %10 : vector<8x1xf32>
    %cst_126 = arith.constant 2.560000e+02 : f32
    %284 = vector.broadcast %cst_126 : f32 to vector<8x1xf32>
    %285 = arith.mulf %284, %283 : vector<8x1xf32>
    %286 = arith.addf %282, %285 : vector<8x1xf32>
    %287 = tpu.iota {dimensions = array<i32: 0>} : vector<8x1xi32>
    %c4_i32_127 = arith.constant 4 : i32
    %288 = vector.broadcast %c4_i32_127 : i32 to vector<8x1xi32>
    %289 = arith.cmpi slt, %287, %288 : vector<8x1xi32>
    %c4_i32_128 = arith.constant 4 : i32
    %290 = vector.broadcast %c4_i32_128 : i32 to vector<8x1xi32>
    %291 = arith.cmpi sge, %287, %290 : vector<8x1xi32>
    %c8_i32 = arith.constant 8 : i32
    %292 = vector.broadcast %c8_i32 : i32 to vector<8x1xi32>
    %293 = arith.cmpi slt, %287, %292 : vector<8x1xi32>
    %294 = arith.andi %291, %293 : vector<8x1xi1>
    %cst_129 = arith.constant 0.000000e+00 : f32
    %295 = vector.broadcast %cst_129 : f32 to vector<8x1xf32>
    %296 = arith.select %289, %278, %295 : vector<8x1xi1>, vector<8x1xf32>
    %cst_130 = arith.constant dense<0.000000e+00> : vector<1xf32>
    %297 = vector.multi_reduction <add>, %296, %cst_130 [0] : vector<8x1xf32> to vector<1xf32>
    %298 = vector.shape_cast %297 : vector<1xf32> to vector<1x1xf32>
    %cst_131 = arith.constant 0.000000e+00 : f32
    %299 = vector.broadcast %cst_131 : f32 to vector<8x1xf32>
    %300 = arith.select %294, %278, %299 : vector<8x1xi1>, vector<8x1xf32>
    %cst_132 = arith.constant dense<0.000000e+00> : vector<1xf32>
    %301 = vector.multi_reduction <add>, %300, %cst_132 [0] : vector<8x1xf32> to vector<1xf32>
    %302 = vector.shape_cast %301 : vector<1xf32> to vector<1x1xf32>
    %cst_133 = arith.constant 0.000000e+00 : f32
    %303 = vector.broadcast %cst_133 : f32 to vector<8x1xf32>
    %304 = arith.select %289, %286, %303 : vector<8x1xi1>, vector<8x1xf32>
    %cst_134 = arith.constant dense<0.000000e+00> : vector<1xf32>
    %305 = vector.multi_reduction <add>, %304, %cst_134 [0] : vector<8x1xf32> to vector<1xf32>
    %306 = vector.shape_cast %305 : vector<1xf32> to vector<1x1xf32>
    %cst_135 = arith.constant 0.000000e+00 : f32
    %307 = vector.broadcast %cst_135 : f32 to vector<8x1xf32>
    %308 = arith.select %294, %286, %307 : vector<8x1xi1>, vector<8x1xf32>
    %cst_136 = arith.constant dense<0.000000e+00> : vector<1xf32>
    %309 = vector.multi_reduction <add>, %308, %cst_136 [0] : vector<8x1xf32> to vector<1xf32>
    %310 = vector.shape_cast %309 : vector<1xf32> to vector<1x1xf32>
    %311 = vector.shape_cast %298 : vector<1x1xf32> to vector<1x1xf32>
    %312 = vector.broadcast %311 : vector<1x1xf32> to vector<8x1xf32>
    %313 = vector.shape_cast %302 : vector<1x1xf32> to vector<1x1xf32>
    %314 = vector.broadcast %313 : vector<1x1xf32> to vector<8x1xf32>
    %315 = arith.select %289, %312, %314 : vector<8x1xi1>, vector<8x1xf32>
    %cst_137 = arith.constant 1.024000e+03 : f32
    %316 = vector.broadcast %cst_137 : f32 to vector<8x1xf32>
    %317 = arith.divf %315, %316 : vector<8x1xf32>
    %318 = vector.shape_cast %306 : vector<1x1xf32> to vector<1x1xf32>
    %319 = vector.broadcast %318 : vector<1x1xf32> to vector<8x1xf32>
    %320 = vector.shape_cast %310 : vector<1x1xf32> to vector<1x1xf32>
    %321 = vector.broadcast %320 : vector<1x1xf32> to vector<8x1xf32>
    %322 = arith.select %289, %319, %321 : vector<8x1xi1>, vector<8x1xf32>
    %cst_138 = arith.constant 1.024000e+03 : f32
    %323 = vector.broadcast %cst_138 : f32 to vector<8x1xf32>
    %324 = arith.divf %322, %323 : vector<8x1xf32>
    %325 = arith.mulf %317, %317 : vector<8x1xf32>
    %326 = arith.subf %324, %325 : vector<8x1xf32>
    %cst_139 = arith.constant 0.000000e+00 : f32
    %327 = vector.broadcast %cst_139 : f32 to vector<8x1xf32>
    %328 = arith.maximumf %326, %327 : vector<8x1xf32>
    %cst_140 = arith.constant 9.99999974E-6 : f32
    %329 = vector.broadcast %cst_140 : f32 to vector<8x1xf32>
    %330 = arith.addf %328, %329 : vector<8x1xf32>
    %331 = math.rsqrt %330 : vector<8x1xf32>
    %332 = arith.mulf %331, %11 : vector<8x1xf32>
    %333 = arith.subf %10, %317 : vector<8x1xf32>
    %334 = arith.mulf %333, %332 : vector<8x1xf32>
    %335 = arith.addf %334, %12 : vector<8x1xf32>
    %336 = vector.broadcast %332 : vector<8x1xf32> to vector<8x256xf32>
    %337 = arith.mulf %270, %336 : vector<8x256xf32>
    %338 = vector.broadcast %335 : vector<8x1xf32> to vector<8x256xf32>
    %339 = arith.addf %337, %338 : vector<8x256xf32>
    %cst_141 = arith.constant 0.707106769 : f32
    %340 = vector.broadcast %cst_141 : f32 to vector<8x256xf32>
    %341 = arith.mulf %339, %340 : vector<8x256xf32>
    %cst_142 = arith.constant 0.000000e+00 : f32
    %342 = vector.broadcast %cst_142 : f32 to vector<8x256xf32>
    %343 = arith.cmpf oge, %341, %342 : vector<8x256xf32>
    %cst_143 = arith.constant 1.000000e+00 : f32
    %cst_144 = arith.constant -1.000000e+00 : f32
    %344 = vector.broadcast %cst_143 : f32 to vector<8x256xf32>
    %345 = vector.broadcast %cst_144 : f32 to vector<8x256xf32>
    %346 = arith.select %343, %344, %345 : vector<8x256xi1>, vector<8x256xf32>
    %347 = math.absf %341 : vector<8x256xf32>
    %cst_145 = arith.constant 0.327591091 : f32
    %348 = vector.broadcast %cst_145 : f32 to vector<8x256xf32>
    %349 = arith.mulf %348, %347 : vector<8x256xf32>
    %cst_146 = arith.constant 1.000000e+00 : f32
    %350 = vector.broadcast %cst_146 : f32 to vector<8x256xf32>
    %351 = arith.addf %350, %349 : vector<8x256xf32>
    %352 = tpu.reciprocal %351 {approx = true} : vector<8x256xf32> -> vector<8x256xf32>
    %cst_147 = arith.constant 1.06140542 : f32
    %353 = vector.broadcast %cst_147 : f32 to vector<8x256xf32>
    %354 = arith.mulf %353, %352 : vector<8x256xf32>
    %cst_148 = arith.constant 1.45315206 : f32
    %355 = vector.broadcast %cst_148 : f32 to vector<8x256xf32>
    %356 = arith.subf %354, %355 : vector<8x256xf32>
    %357 = arith.mulf %356, %352 : vector<8x256xf32>
    %cst_149 = arith.constant 1.42141378 : f32
    %358 = vector.broadcast %cst_149 : f32 to vector<8x256xf32>
    %359 = arith.addf %357, %358 : vector<8x256xf32>
    %360 = arith.mulf %359, %352 : vector<8x256xf32>
    %cst_150 = arith.constant 0.284496725 : f32
    %361 = vector.broadcast %cst_150 : f32 to vector<8x256xf32>
    %362 = arith.subf %360, %361 : vector<8x256xf32>
    %363 = arith.mulf %362, %352 : vector<8x256xf32>
    %cst_151 = arith.constant 0.254829586 : f32
    %364 = vector.broadcast %cst_151 : f32 to vector<8x256xf32>
    %365 = arith.addf %363, %364 : vector<8x256xf32>
    %366 = arith.mulf %365, %352 : vector<8x256xf32>
    %cst_152 = arith.constant 0.000000e+00 : f32
    %367 = vector.broadcast %cst_152 : f32 to vector<8x256xf32>
    %368 = arith.subf %367, %347 : vector<8x256xf32>
    %369 = arith.mulf %368, %347 : vector<8x256xf32>
    %370 = math.exp %369 : vector<8x256xf32>
    %371 = arith.mulf %366, %370 : vector<8x256xf32>
    %cst_153 = arith.constant 1.000000e+00 : f32
    %372 = vector.broadcast %cst_153 : f32 to vector<8x256xf32>
    %373 = arith.subf %372, %371 : vector<8x256xf32>
    %374 = arith.mulf %346, %373 : vector<8x256xf32>
    %cst_154 = arith.constant 5.000000e-01 : f32
    %375 = vector.broadcast %cst_154 : f32 to vector<8x256xf32>
    %376 = arith.mulf %375, %339 : vector<8x256xf32>
    %cst_155 = arith.constant 1.000000e+00 : f32
    %377 = vector.broadcast %cst_155 : f32 to vector<8x256xf32>
    %378 = arith.addf %377, %374 : vector<8x256xf32>
    %379 = arith.mulf %376, %378 : vector<8x256xf32>
    %c17_i32_156 = arith.constant 17 : i32
    %380 = tpu.dynamic_rotate %379 by %c17_i32_156 dim 1 : vector<8x256xf32>, i32 -> vector<8x256xf32>
    %c16_i32_157 = arith.constant 16 : i32
    %381 = tpu.dynamic_rotate %379 by %c16_i32_157 dim 1 : vector<8x256xf32>, i32 -> vector<8x256xf32>
    %c15_i32_158 = arith.constant 15 : i32
    %382 = tpu.dynamic_rotate %379 by %c15_i32_158 dim 1 : vector<8x256xf32>, i32 -> vector<8x256xf32>
    %c1_i32_159 = arith.constant 1 : i32
    %383 = tpu.dynamic_rotate %379 by %c1_i32_159 dim 1 : vector<8x256xf32>, i32 -> vector<8x256xf32>
    %c255_i32_160 = arith.constant 255 : i32
    %384 = tpu.dynamic_rotate %379 by %c255_i32_160 dim 1 : vector<8x256xf32>, i32 -> vector<8x256xf32>
    %c241_i32_161 = arith.constant 241 : i32
    %385 = tpu.dynamic_rotate %379 by %c241_i32_161 dim 1 : vector<8x256xf32>, i32 -> vector<8x256xf32>
    %c240_i32_162 = arith.constant 240 : i32
    %386 = tpu.dynamic_rotate %379 by %c240_i32_162 dim 1 : vector<8x256xf32>, i32 -> vector<8x256xf32>
    %c239_i32_163 = arith.constant 239 : i32
    %387 = tpu.dynamic_rotate %379 by %c239_i32_163 dim 1 : vector<8x256xf32>, i32 -> vector<8x256xf32>
    %388 = tpu.concatenate %380, %381, %382, %383, %379, %384, %385, %386, %387 in 0 : vector<8x256xf32>, vector<8x256xf32>, vector<8x256xf32>, vector<8x256xf32>, vector<8x256xf32>, vector<8x256xf32>, vector<8x256xf32>, vector<8x256xf32>, vector<8x256xf32> -> vector<72x256xf32>
    %389 = arith.mulf %388, %0 : vector<72x256xf32>
    %cst_164 = arith.constant dense<0.000000e+00> : vector<8x256xf32>
    %390 = tpu.matmul %13, %389, %cst_164 {dimension_numbers = #tpu.dot_dimension_numbers<[1], [0], [0], [1], [0, 0, 1, 1], [], []>} : vector<8x72xf32>, vector<72x256xf32>, vector<8x256xf32> -> vector<8x256xf32>
    %cst_165 = arith.constant dense<0.000000e+00> : vector<8xf32>
    %391 = vector.multi_reduction <add>, %390, %cst_165 [1] : vector<8x256xf32> to vector<8xf32>
    %392 = vector.shape_cast %391 : vector<8xf32> to vector<8x1xf32>
    %393 = arith.mulf %390, %390 : vector<8x256xf32>
    %cst_166 = arith.constant dense<0.000000e+00> : vector<8xf32>
    %394 = vector.multi_reduction <add>, %393, %cst_166 [1] : vector<8x256xf32> to vector<8xf32>
    %395 = vector.shape_cast %394 : vector<8xf32> to vector<8x1xf32>
    %cst_167 = arith.constant 2.560000e+02 : f32
    %396 = vector.broadcast %cst_167 : f32 to vector<8x1xf32>
    %397 = arith.mulf %396, %14 : vector<8x1xf32>
    %398 = arith.addf %392, %397 : vector<8x1xf32>
    %cst_168 = arith.constant 2.000000e+00 : f32
    %399 = vector.broadcast %cst_168 : f32 to vector<8x1xf32>
    %400 = arith.mulf %399, %14 : vector<8x1xf32>
    %401 = arith.mulf %400, %392 : vector<8x1xf32>
    %402 = arith.addf %395, %401 : vector<8x1xf32>
    %403 = arith.mulf %14, %14 : vector<8x1xf32>
    %cst_169 = arith.constant 2.560000e+02 : f32
    %404 = vector.broadcast %cst_169 : f32 to vector<8x1xf32>
    %405 = arith.mulf %404, %403 : vector<8x1xf32>
    %406 = arith.addf %402, %405 : vector<8x1xf32>
    %407 = tpu.iota {dimensions = array<i32: 0>} : vector<8x1xi32>
    %c4_i32_170 = arith.constant 4 : i32
    %408 = vector.broadcast %c4_i32_170 : i32 to vector<8x1xi32>
    %409 = arith.cmpi slt, %407, %408 : vector<8x1xi32>
    %c4_i32_171 = arith.constant 4 : i32
    %410 = vector.broadcast %c4_i32_171 : i32 to vector<8x1xi32>
    %411 = arith.cmpi sge, %407, %410 : vector<8x1xi32>
    %c8_i32_172 = arith.constant 8 : i32
    %412 = vector.broadcast %c8_i32_172 : i32 to vector<8x1xi32>
    %413 = arith.cmpi slt, %407, %412 : vector<8x1xi32>
    %414 = arith.andi %411, %413 : vector<8x1xi1>
    %cst_173 = arith.constant 0.000000e+00 : f32
    %415 = vector.broadcast %cst_173 : f32 to vector<8x1xf32>
    %416 = arith.select %409, %398, %415 : vector<8x1xi1>, vector<8x1xf32>
    %cst_174 = arith.constant dense<0.000000e+00> : vector<1xf32>
    %417 = vector.multi_reduction <add>, %416, %cst_174 [0] : vector<8x1xf32> to vector<1xf32>
    %418 = vector.shape_cast %417 : vector<1xf32> to vector<1x1xf32>
    %cst_175 = arith.constant 0.000000e+00 : f32
    %419 = vector.broadcast %cst_175 : f32 to vector<8x1xf32>
    %420 = arith.select %414, %398, %419 : vector<8x1xi1>, vector<8x1xf32>
    %cst_176 = arith.constant dense<0.000000e+00> : vector<1xf32>
    %421 = vector.multi_reduction <add>, %420, %cst_176 [0] : vector<8x1xf32> to vector<1xf32>
    %422 = vector.shape_cast %421 : vector<1xf32> to vector<1x1xf32>
    %cst_177 = arith.constant 0.000000e+00 : f32
    %423 = vector.broadcast %cst_177 : f32 to vector<8x1xf32>
    %424 = arith.select %409, %406, %423 : vector<8x1xi1>, vector<8x1xf32>
    %cst_178 = arith.constant dense<0.000000e+00> : vector<1xf32>
    %425 = vector.multi_reduction <add>, %424, %cst_178 [0] : vector<8x1xf32> to vector<1xf32>
    %426 = vector.shape_cast %425 : vector<1xf32> to vector<1x1xf32>
    %cst_179 = arith.constant 0.000000e+00 : f32
    %427 = vector.broadcast %cst_179 : f32 to vector<8x1xf32>
    %428 = arith.select %414, %406, %427 : vector<8x1xi1>, vector<8x1xf32>
    %cst_180 = arith.constant dense<0.000000e+00> : vector<1xf32>
    %429 = vector.multi_reduction <add>, %428, %cst_180 [0] : vector<8x1xf32> to vector<1xf32>
    %430 = vector.shape_cast %429 : vector<1xf32> to vector<1x1xf32>
    %431 = vector.shape_cast %418 : vector<1x1xf32> to vector<1x1xf32>
    %432 = vector.broadcast %431 : vector<1x1xf32> to vector<8x1xf32>
    %433 = vector.shape_cast %422 : vector<1x1xf32> to vector<1x1xf32>
    %434 = vector.broadcast %433 : vector<1x1xf32> to vector<8x1xf32>
    %435 = arith.select %409, %432, %434 : vector<8x1xi1>, vector<8x1xf32>
    %cst_181 = arith.constant 1.024000e+03 : f32
    %436 = vector.broadcast %cst_181 : f32 to vector<8x1xf32>
    %437 = arith.divf %435, %436 : vector<8x1xf32>
    %438 = vector.shape_cast %426 : vector<1x1xf32> to vector<1x1xf32>
    %439 = vector.broadcast %438 : vector<1x1xf32> to vector<8x1xf32>
    %440 = vector.shape_cast %430 : vector<1x1xf32> to vector<1x1xf32>
    %441 = vector.broadcast %440 : vector<1x1xf32> to vector<8x1xf32>
    %442 = arith.select %409, %439, %441 : vector<8x1xi1>, vector<8x1xf32>
    %cst_182 = arith.constant 1.024000e+03 : f32
    %443 = vector.broadcast %cst_182 : f32 to vector<8x1xf32>
    %444 = arith.divf %442, %443 : vector<8x1xf32>
    %445 = arith.mulf %437, %437 : vector<8x1xf32>
    %446 = arith.subf %444, %445 : vector<8x1xf32>
    %cst_183 = arith.constant 0.000000e+00 : f32
    %447 = vector.broadcast %cst_183 : f32 to vector<8x1xf32>
    %448 = arith.maximumf %446, %447 : vector<8x1xf32>
    %cst_184 = arith.constant 9.99999974E-6 : f32
    %449 = vector.broadcast %cst_184 : f32 to vector<8x1xf32>
    %450 = arith.addf %448, %449 : vector<8x1xf32>
    %451 = math.rsqrt %450 : vector<8x1xf32>
    %452 = arith.mulf %451, %15 : vector<8x1xf32>
    %453 = arith.subf %14, %437 : vector<8x1xf32>
    %454 = arith.mulf %453, %452 : vector<8x1xf32>
    %455 = arith.addf %454, %16 : vector<8x1xf32>
    %456 = vector.broadcast %452 : vector<8x1xf32> to vector<8x256xf32>
    %457 = arith.mulf %390, %456 : vector<8x256xf32>
    %458 = vector.broadcast %455 : vector<8x1xf32> to vector<8x256xf32>
    %459 = arith.addf %457, %458 : vector<8x256xf32>
    %cst_185 = arith.constant 0.707106769 : f32
    %460 = vector.broadcast %cst_185 : f32 to vector<8x256xf32>
    %461 = arith.mulf %459, %460 : vector<8x256xf32>
    %cst_186 = arith.constant 0.000000e+00 : f32
    %462 = vector.broadcast %cst_186 : f32 to vector<8x256xf32>
    %463 = arith.cmpf oge, %461, %462 : vector<8x256xf32>
    %cst_187 = arith.constant 1.000000e+00 : f32
    %cst_188 = arith.constant -1.000000e+00 : f32
    %464 = vector.broadcast %cst_187 : f32 to vector<8x256xf32>
    %465 = vector.broadcast %cst_188 : f32 to vector<8x256xf32>
    %466 = arith.select %463, %464, %465 : vector<8x256xi1>, vector<8x256xf32>
    %467 = math.absf %461 : vector<8x256xf32>
    %cst_189 = arith.constant 0.327591091 : f32
    %468 = vector.broadcast %cst_189 : f32 to vector<8x256xf32>
    %469 = arith.mulf %468, %467 : vector<8x256xf32>
    %cst_190 = arith.constant 1.000000e+00 : f32
    %470 = vector.broadcast %cst_190 : f32 to vector<8x256xf32>
    %471 = arith.addf %470, %469 : vector<8x256xf32>
    %472 = tpu.reciprocal %471 {approx = true} : vector<8x256xf32> -> vector<8x256xf32>
    %cst_191 = arith.constant 1.06140542 : f32
    %473 = vector.broadcast %cst_191 : f32 to vector<8x256xf32>
    %474 = arith.mulf %473, %472 : vector<8x256xf32>
    %cst_192 = arith.constant 1.45315206 : f32
    %475 = vector.broadcast %cst_192 : f32 to vector<8x256xf32>
    %476 = arith.subf %474, %475 : vector<8x256xf32>
    %477 = arith.mulf %476, %472 : vector<8x256xf32>
    %cst_193 = arith.constant 1.42141378 : f32
    %478 = vector.broadcast %cst_193 : f32 to vector<8x256xf32>
    %479 = arith.addf %477, %478 : vector<8x256xf32>
    %480 = arith.mulf %479, %472 : vector<8x256xf32>
    %cst_194 = arith.constant 0.284496725 : f32
    %481 = vector.broadcast %cst_194 : f32 to vector<8x256xf32>
    %482 = arith.subf %480, %481 : vector<8x256xf32>
    %483 = arith.mulf %482, %472 : vector<8x256xf32>
    %cst_195 = arith.constant 0.254829586 : f32
    %484 = vector.broadcast %cst_195 : f32 to vector<8x256xf32>
    %485 = arith.addf %483, %484 : vector<8x256xf32>
    %486 = arith.mulf %485, %472 : vector<8x256xf32>
    %cst_196 = arith.constant 0.000000e+00 : f32
    %487 = vector.broadcast %cst_196 : f32 to vector<8x256xf32>
    %488 = arith.subf %487, %467 : vector<8x256xf32>
    %489 = arith.mulf %488, %467 : vector<8x256xf32>
    %490 = math.exp %489 : vector<8x256xf32>
    %491 = arith.mulf %486, %490 : vector<8x256xf32>
    %cst_197 = arith.constant 1.000000e+00 : f32
    %492 = vector.broadcast %cst_197 : f32 to vector<8x256xf32>
    %493 = arith.subf %492, %491 : vector<8x256xf32>
    %494 = arith.mulf %466, %493 : vector<8x256xf32>
    %cst_198 = arith.constant 5.000000e-01 : f32
    %495 = vector.broadcast %cst_198 : f32 to vector<8x256xf32>
    %496 = arith.mulf %495, %459 : vector<8x256xf32>
    %cst_199 = arith.constant 1.000000e+00 : f32
    %497 = vector.broadcast %cst_199 : f32 to vector<8x256xf32>
    %498 = arith.addf %497, %494 : vector<8x256xf32>
    %499 = arith.mulf %496, %498 : vector<8x256xf32>
    %c0_200 = arith.constant 0 : index
    %c0_201 = arith.constant 0 : index
    %c0_202 = arith.constant 0 : index
    %500 = vector.load %arg19[%c0_200, %c0_201, %c0_202] : memref<1x8x256xf32, #tpu.memory_space<vmem>>, vector<1x8x256xf32>
    %501 = vector.shape_cast %500 : vector<1x8x256xf32> to vector<8x256xf32>
    %502 = vector.shape_cast %499 : vector<8x256xf32> to vector<1x8x256xf32>
    tpu.vector_store %arg19[%c0_200, %c0_201, %c0_202], %502 {strides = array<i32>} : memref<1x8x256xf32, #tpu.memory_space<vmem>>, vector<1x8x256xf32>,
    return
  }
  func.func @transform_0(%arg0: i32) -> (i32, i32) {
    %c0_i32 = arith.constant 0 : i32
    %c0_i32_0 = arith.constant 0 : i32
    %c0_i32_1 = arith.constant 0 : i32
    return %c0_i32, %c0_i32_0 : i32, i32
  }
  func.func @transform_1(%arg0: i32) -> (i32, i32, i32) {
    %c0_i32 = arith.constant 0 : i32
    %c0_i32_0 = arith.constant 0 : i32
    %c0_i32_1 = arith.constant 0 : i32
    return %arg0, %c0_i32, %c0_i32_0 : i32, i32, i32
  }
  func.func @transform_2(%arg0: i32) -> (i32, i32) {
    %c0_i32 = arith.constant 0 : i32
    %c0_i32_0 = arith.constant 0 : i32
    %c0_i32_1 = arith.constant 0 : i32
    return %c0_i32, %c0_i32_0 : i32, i32
  }
  func.func @transform_3(%arg0: i32) -> (i32, i32) {
    %c0_i32 = arith.constant 0 : i32
    %c0_i32_0 = arith.constant 0 : i32
    %c0_i32_1 = arith.constant 0 : i32
    return %c0_i32, %c0_i32_0 : i32, i32
  }
  func.func @transform_4(%arg0: i32) -> (i32, i32) {
    %c0_i32 = arith.constant 0 : i32
    %c0_i32_0 = arith.constant 0 : i32
    %c0_i32_1 = arith.constant 0 : i32
    return %c0_i32, %c0_i32_0 : i32, i32
  }
  func.func @transform_5(%arg0: i32) -> (i32, i32) {
    %c0_i32 = arith.constant 0 : i32
    %c0_i32_0 = arith.constant 0 : i32
    %c0_i32_1 = arith.constant 0 : i32
    return %c0_i32, %c0_i32_0 : i32, i32
  }
  func.func @transform_6(%arg0: i32) -> (i32, i32) {
    %c0_i32 = arith.constant 0 : i32
    %c0_i32_0 = arith.constant 0 : i32
    %c0_i32_1 = arith.constant 0 : i32
    return %c0_i32, %c0_i32_0 : i32, i32
  }
  func.func @transform_7(%arg0: i32) -> (i32, i32) {
    %c0_i32 = arith.constant 0 : i32
    %c0_i32_0 = arith.constant 0 : i32
    %c0_i32_1 = arith.constant 0 : i32
    return %c0_i32, %c0_i32_0 : i32, i32
  }
  func.func @transform_8(%arg0: i32) -> (i32, i32) {
    %c0_i32 = arith.constant 0 : i32
    %c0_i32_0 = arith.constant 0 : i32
    %c0_i32_1 = arith.constant 0 : i32
    return %c0_i32, %c0_i32_0 : i32, i32
  }
  func.func @transform_9(%arg0: i32) -> (i32, i32) {
    %c0_i32 = arith.constant 0 : i32
    %c0_i32_0 = arith.constant 0 : i32
    %c0_i32_1 = arith.constant 0 : i32
    return %c0_i32, %c0_i32_0 : i32, i32
  }
  func.func @transform_10(%arg0: i32) -> (i32, i32) {
    %c0_i32 = arith.constant 0 : i32
    %c0_i32_0 = arith.constant 0 : i32
    %c0_i32_1 = arith.constant 0 : i32
    return %c0_i32, %c0_i32_0 : i32, i32
  }
  func.func @transform_11(%arg0: i32) -> (i32, i32) {
    %c0_i32 = arith.constant 0 : i32
    %c0_i32_0 = arith.constant 0 : i32
    %c0_i32_1 = arith.constant 0 : i32
    return %c0_i32, %c0_i32_0 : i32, i32
  }
  func.func @transform_12(%arg0: i32) -> (i32, i32) {
    %c0_i32 = arith.constant 0 : i32
    %c0_i32_0 = arith.constant 0 : i32
    %c0_i32_1 = arith.constant 0 : i32
    return %c0_i32, %c0_i32_0 : i32, i32
  }
  func.func @transform_13(%arg0: i32) -> (i32, i32) {
    %c0_i32 = arith.constant 0 : i32
    %c0_i32_0 = arith.constant 0 : i32
    %c0_i32_1 = arith.constant 0 : i32
    return %c0_i32, %c0_i32_0 : i32, i32
  }
  func.func @transform_14(%arg0: i32) -> (i32, i32) {
    %c0_i32 = arith.constant 0 : i32
    %c0_i32_0 = arith.constant 0 : i32
    %c0_i32_1 = arith.constant 0 : i32
    return %c0_i32, %c0_i32_0 : i32, i32
  }
  func.func @transform_15(%arg0: i32) -> (i32, i32) {
    %c0_i32 = arith.constant 0 : i32
    %c0_i32_0 = arith.constant 0 : i32
    %c0_i32_1 = arith.constant 0 : i32
    return %c0_i32, %c0_i32_0 : i32, i32
  }
  func.func @transform_16(%arg0: i32) -> (i32, i32) {
    %c0_i32 = arith.constant 0 : i32
    %c0_i32_0 = arith.constant 0 : i32
    %c0_i32_1 = arith.constant 0 : i32
    return %c0_i32, %c0_i32_0 : i32, i32
  }
  func.func @transform_17(%arg0: i32) -> (i32, i32) {
    %c0_i32 = arith.constant 0 : i32
    %c0_i32_0 = arith.constant 0 : i32
    %c0_i32_1 = arith.constant 0 : i32
    return %c0_i32, %c0_i32_0 : i32, i32
  }
  func.func @transform_18(%arg0: i32) -> (i32, i32, i32) {
    %c0_i32 = arith.constant 0 : i32
    %c0_i32_0 = arith.constant 0 : i32
    %c0_i32_1 = arith.constant 0 : i32
    return %arg0, %c0_i32, %c0_i32_0 : i32, i32, i32
  }
}

</mosaic_0001>

<bundles_post_ra>
// kernel: upconv_forward.1
= control target key start
LH: loop header
LB: loop body
LE: loop exit
PB: predicated region body
PF: predicated region fallthrough
CT: control target
= control target key end

     0   :  { %s2052_s27 = smov 0   ;;  %s2708_s0 = inlined_call_operand.vmem [shape: f32[72,256], index: 0, kind: input, shape index: {}]   ;;  %s2709_s1 = inlined_call_operand.vmem [shape: f32[2,8,256], index: 1, kind: input, shape index: {}]   ;;  %s2710_s2 = inlined_call_operand.vmem [shape: f32[8,72], index: 2, kind: input, shape index: {}]   ;;  %s2711_s3 = inlined_call_operand.vmem [shape: f32[8,1], index: 3, kind: input, shape index: {}]   ;;  %s2712_s4 = inlined_call_operand.vmem [shape: f32[8,1], index: 4, kind: input, shape index: {}]   ;;  %s2713_s5 = inlined_call_operand.vmem [shape: f32[8,1], index: 5, kind: input, shape index: {}]   ;;  %s2714_s6 = inlined_call_operand.vmem [shape: f32[8,72], index: 6, kind: input, shape index: {}]   ;;  %s2715_s7 = inlined_call_operand.vmem [shape: f32[8,1], index: 7, kind: input, shape index: {}]   ;;  %s2716_s8 = inlined_call_operand.vmem [shape: f32[8,1], index: 8, kind: input, shape index: {}]   ;;  %s2717_s9 = inlined_call_operand.vmem [shape: f32[8,1], index: 9, kind: input, shape index: {}]   ;;  %s2718_s10 = inlined_call_operand.vmem [shape: f32[8,72], index: 10, kind: input, shape index: {}]   ;;  %s2719_s11 = inlined_call_operand.vmem [shape: f32[8,1], index: 11, kind: input, shape index: {}]   ;;  %s2720_s12 = inlined_call_operand.vmem [shape: f32[8,1], index: 12, kind: input, shape index: {}]   ;;  %s2721_s13 = inlined_call_operand.vmem [shape: f32[8,1], index: 13, kind: input, shape index: {}]   ;;  %s2722_s14 = inlined_call_operand.vmem [shape: f32[8,72], index: 14, kind: input, shape index: {}]   ;;  %s2723_s15 = inlined_call_operand.vmem [shape: f32[8,1], index: 15, kind: input, shape index: {}]   ;;  %s2724_s16 = inlined_call_operand.vmem [shape: f32[8,1], index: 16, kind: input, shape index: {}]   ;;  %s2725_s17 = inlined_call_operand.vmem [shape: f32[8,1], index: 17, kind: input, shape index: {}]   ;;  %s2726_s18 = inlined_call_operand.vmem [shape: f32[2,8,256], index: 18, kind: output, shape index: {}]  }
   0x1   :  { %2737 = sst [smem:[#allocation2_spill]] %s2708_s0 }
   0x2   :  { %2738 = sst [smem:[#allocation3_spill]] %s2709_s1 }
   0x3   :  { %2739 = sst [smem:[#allocation4_spill]] %s2710_s2 }
   0x4 LB: > { %s1762_s28 = sadd.s32 4294967295, %s1944_s27   ;;  %p1766_p0 = scmp.ge.s32.totalorder %s1944_s27, 1  ;;  %s1944_s27 = sphi %s2052_s27, %s28_s27  }
   0x5   : > { %p512_p1 = scmp.lt.s32.totalorder %s1944_s27, 3 }
   0x7   : > { %p513_p2 = pnand %p1766_p0, %p512_p1 }
   0x8   : > { %p566_p3 = scmp.lt.s32.totalorder (!%p513_p2), %s1762_s28, 1  ;;  %s2740_s19 = sld [smem:[#allocation3_spill]] (!%p513_p2)  ;;  %v1952_v2 = vmov (!%p513_p2), 0.0   ;;  %v616_v3 = vlaneseq (!%p513_p2)  ;;  %vm688_vm8 = vcmask (!%p513_p2), 588800   ;;  %vm786_vm13 = vcmask (!%p513_p2), 7168  }
   0x9   : > { %516 = sbr.rel (%p513_p2) target bundleno = 2958 (0xb8e), region = 92  ;;  %s2735_s20 = smov (!%p513_p2), 16   ;;  %756 = vmatprep.mubr.f32.mxu0 (!%p513_p2), %v1952_v2  ;;  %1031 = vmatprep.mubr.f32.mxu1 (!%p513_p2), %v1952_v2 }
   0xa   : > { %s1947_s21 = smov (!%p513_p2), 17   ;;  %s2729_s22 = smov (!%p513_p2), 15   ;;  %v2107_v4 = vand.u32 (!%p513_p2), 127, %v616_v3 }
   0xb   : > { %s1949_s2 = smov (!%p513_p2), 1   ;;  %s1950_s23 = smov (!%p513_p2), 127  }
   0xc   : > { %s1951_s24 = smov (!%p513_p2), 113   ;;  %s2733_s25 = smov (!%p513_p2), 112   ;;  %vm625_vm0 = vcmp.lt.s32.totalorder (!%p513_p2), %v2107_v4, 16  ;;  %vm618_vm1 = vcmp.lt.s32.totalorder (!%p513_p2), %v2107_v4, 17  ;;  %vm632_vm2 = vcmp.lt.s32.totalorder (!%p513_p2), %v2107_v4, 15  ;;  %vm639_vm3 = vcmp.lt.s32.totalorder (!%p513_p2), %v2107_v4, 1 }
   0xd   : > { %s2731_s26 = smov (!%p513_p2), 111   ;;  %vm646_vm4 = vcmp.lt.s32.totalorder (!%p513_p2), %v2107_v4, 127  ;;  %vm653_vm5 = vcmp.lt.s32.totalorder (!%p513_p2), %v2107_v4, 113  ;;  %vm660_vm6 = vcmp.lt.s32.totalorder (!%p513_p2), %v2107_v4, 112  ;;  %vm667_vm7 = vcmp.lt.s32.totalorder (!%p513_p2), %v2107_v4, 111  ;;  %s2742_s0 = sld [smem:[#allocation4_spill]] (!%p513_p2) }
   0xe   : > { %s2745_s30 = smov (!%p513_p2), 16  }
  0x10   : > { %s2751_s28 = smov (!%p566_p3, %s1762_s28), 1 }
  0x11   : > { %s2728_s29 = sshll.u32 %s2751_s28, 4 }
  0x12   : > { %s570_s1 = scalar_lea.vmem %s2740_s19, %s2728_s29  ;;  %s2741_s19 = sld [smem:[#allocation2_spill]] }
  0x13   : > { %v2068_v0 = vld [vmem:[%s570_s1] sm:$0xff]  ;;  %v2074_v1 = vld [vmem:[%s570_s1 + $0x8] sm:$0xff]  ;;  %s2747_s1 = smov 111   ;;  %s2748_s29 = smov 15  }
  0x14   : > { %621 = vrot.lane.b32.xlu1 %v2068_v0, %s2735_s20  ;;  %612 = vrot.lane.b32.xlu0 %v2068_v0, %s1947_s21 }
  0x18   : > { %623 = vrot.lane.b32.xlu1 %v2074_v1, %s2735_s20  ;;  %614 = vrot.lane.b32.xlu0 %v2074_v1, %s1947_s21  ;;  %v2112_v7 = vld [vmem:[%s2741_s19 + $0x10] sm:$0xff]  ;;  %v2119_v8 = vld [vmem:[%s2741_s19] sm:$0xff]  ;;  %s2749_s20 = sshll.u32 %s2751_s28, 4 }
  0x19   : > { %v2124_v9 = vld [vmem:[%s2741_s19 + $0x8] sm:$0xff]  ;;  %v2129_v10 = vld [vmem:[%s2741_s19 + $0x18] sm:$0xff]  ;;  %v2147_v25 = vld [vmem:[%s2741_s19 + $0x20] sm:$0xff] }
  0x1a   : > { %v2153_v26 = vld [vmem:[%s2741_s19 + $0x28] sm:$0xff]  ;;  %v2162_v29 = vld [vmem:[%s2741_s19 + $0x30] sm:$0xff]  ;;  %v2167_v30 = vld [vmem:[%s2741_s19 + $0x38] sm:$0xff] }
  0x1b   : > { %v2177_v35 = vld [vmem:[%s2741_s19 + $0x48] sm:$0xff]  ;;  %v2182_v36 = vld [vmem:[%s2741_s19 + $0x40] sm:$0xff]  ;;  %v2191_v41 = vld [vmem:[%s2741_s19 + $0x50] sm:$0xff] }
  0x1c   : > { %630 = vrot.lane.b32.xlu1 %v2074_v1, %s2729_s22  ;;  %628 = vrot.lane.b32.xlu0 %v2068_v0, %s2729_s22  ;;  %v2196_v42 = vld [vmem:[%s2741_s19 + $0x58] sm:$0xff]  ;;  %v679_v47 = vmul.f32 %v2074_v1, %v2177_v35  ;;  %v678_v48 = vmul.f32 %v2068_v0, %v2182_v36  ;;  %v2212_v57 = vld [vmem:[%s2741_s19 + $0x60] sm:$0xff] }
  0x1d   : > { %v2218_v58 = vld [vmem:[%s2741_s19 + $0x68] sm:$0xff]  ;;  %v2227_v61 = vld [vmem:[%s2741_s19 + $0x70] sm:$0xff]  ;;  %v2232_v62 = vld [vmem:[%s2741_s19 + $0x78] sm:$0xff] }
  0x20   : > { %637 = vrot.lane.b32.xlu1 %v2074_v1, %s1949_s2  ;;  %635 = vrot.lane.b32.xlu0 %v2068_v0, %s1949_s2 }
  0x24   : > { %644 = vrot.lane.b32.xlu1 %v2074_v1, %s1950_s23  ;;  %642 = vrot.lane.b32.xlu0 %v2068_v0, %s1950_s23 }
  0x28   : > { %651 = vrot.lane.b32.xlu1 %v2074_v1, %s1951_s24  ;;  %649 = vrot.lane.b32.xlu0 %v2068_v0, %s1951_s24 }
  0x2c   : > { %658 = vrot.lane.b32.xlu1 %v2074_v1, %s2733_s25  ;;  %656 = vrot.lane.b32.xlu0 %v2068_v0, %s2733_s25 }
  0x30   : > { %665 = vrot.lane.b32.xlu1 %v2074_v1, %s2731_s26  ;;  %663 = vrot.lane.b32.xlu0 %v2068_v0, %s2731_s26  ;;  %s575_s26 = scalar_lea.vmem %s2726_s18, %s2749_s20 }
  0x86   : > { %v622_v5 = vpop.permute.xlu1 %621  ;;  %v613_v6 = vpop.permute.xlu0 %612 }
  0x8a   : > { %v624_v11 = vpop.permute.xlu1 %623  ;;  %v615_v12 = vpop.permute.xlu0 %614 }
  0x8b   : > { %v626_v13 = vsel %vm625_vm0, %v622_v5, %v624_v11  ;;  %v627_v14 = vsel %vm625_vm0, %v624_v11, %v622_v5  ;;  %v619_v15 = vsel %vm618_vm1, %v613_v6, %v615_v12  ;;  %v620_v16 = vsel %vm618_vm1, %v615_v12, %v613_v6 }
  0x8c   : > { %v672_v17 = vmul.f32 %v627_v14, %v2112_v7  ;;  %v670_v18 = vmul.f32 %v620_v16, %v2119_v8  ;;  %v671_v19 = vmul.f32 %v619_v15, %v2124_v9  ;;  %v673_v20 = vmul.f32 %v626_v13, %v2129_v10  ;;  %v2246_v16 = vld [vmem:[%s2741_s19 + $0x88] sm:$0xff] }
  0x8e   : > { %v631_v21 = vpop.permute.xlu1 %630  ;;  %v629_v22 = vpop.permute.xlu0 %628  ;;  %v1795_v23 = vpack.c.bf16 %v673_v20, %v671_v19  ;;  %v1797_v24 = vpack.c.bf16 %v672_v17, %v670_v18  ;;  %v2251_v18 = vld [vmem:[%s2741_s19 + $0x80] sm:$0xff] }
  0x8f   : > { %v633_v27 = vsel %vm632_vm2, %v629_v22, %v631_v21  ;;  %v634_v28 = vsel %vm632_vm2, %v631_v21, %v629_v22 }
  0x90   : > { %1796 = vmatprep.subr.bf16.mxu0 %v1795_v23  ;;  %v674_v37 = vmul.f32 %v634_v28, %v2147_v25  ;;  %v675_v38 = vmul.f32 %v633_v27, %v2153_v26  ;;  %v594_v28 = vld [vmem:[%s2742_s0] sm:$0xff]  ;;  %s2746_s0 = smov 112  }
  0x91   : > { %1798 = vmatpush1.bf16.msra.mxu0 %v1797_v24 }
  0x92   : > { %v638_v31 = vpop.permute.xlu1 %637  ;;  %v636_v32 = vpop.permute.xlu0 %635 }
  0x93   : > { %v640_v33 = vsel %vm639_vm3, %v636_v32, %v638_v31  ;;  %v641_v34 = vsel %vm639_vm3, %v638_v31, %v636_v32 }
  0x94   : > { %v676_v39 = vmul.f32 %v641_v34, %v2162_v29  ;;  %v677_v40 = vmul.f32 %v640_v33, %v2167_v30 }
  0x96   : > { %v645_v43 = vpop.permute.xlu1 %644  ;;  %v643_v44 = vpop.permute.xlu0 %642  ;;  %v1799_v45 = vpack.c.bf16 %v677_v40, %v675_v38  ;;  %v1801_v46 = vpack.c.bf16 %v676_v39, %v674_v37  ;;  %v1955_v39 = vmov 0   ;;  %v2277_v40 = vld [vmem:[%s2711_s3] sm:$0xff] }
  0x97   : > { %v647_v49 = vsel %vm646_vm4, %v643_v44, %v645_v43  ;;  %v648_v50 = vsel %vm646_vm4, %v645_v43, %v643_v44  ;;  %1878 = vset.pattern.permute.xlu0 %v1955_v39  ;;  %1879 = vset.pattern.permute.xlu1 %v1955_v39  ;;  %v2280_v43 = vshrl.u32 %v616_v3, 7  ;;  %v771_v44 = vmul.f32 256.0, %v2277_v40 }
  0x98   : > { %v680_v51 = vmul.f32 %v647_v49, %v2191_v41  ;;  %v681_v52 = vmul.f32 %v648_v50, %v2196_v42  ;;  %1800 = vmatprep.subr.bf16.mxu0 %v1799_v45  ;;  %v773_v45 = vmul.f32 2.0, %v2277_v40 }
  0x99   : > { %1802 = vmatpush1.bf16.msra.mxu0 %v1801_v46  ;;  %vm782_vm9 = vcmp.ge.s32.totalorder %v2280_v43, 2  ;;  %vm783_vm10 = vcmp.lt.s32.totalorder %v2280_v43, 4  ;;  %v776_v46 = vmul.f32 %v2277_v40, %v2277_v40  ;;  %vm781_vm11 = vcmp.lt.s32.totalorder %v2280_v43, 2 }
  0x9a   : > { %v652_v53 = vpop.permute.xlu1 %651  ;;  %v650_v54 = vpop.permute.xlu0 %649  ;;  %v1803_v55 = vpack.c.bf16 %v681_v52, %v679_v47  ;;  %v1805_v56 = vpack.c.bf16 %v680_v51, %v678_v48  ;;  %vm2291_vm12 = vmand %vm782_vm9, %vm783_vm10 }
  0x9b   : > { %v654_v59 = vsel %vm653_vm5, %v650_v54, %v652_v53  ;;  %v655_v60 = vsel %vm653_vm5, %v652_v53, %v650_v54  ;;  %v777_v50 = vmul.f32 256.0, %v776_v46 }
  0x9c   : > { %1804 = vmatprep.subr.bf16.mxu0 %v1803_v55  ;;  %v682_v12 = vmul.f32 %v654_v59, %v2212_v57  ;;  %v683_v13 = vmul.f32 %v655_v60, %v2218_v58 }
  0x9d   : > { %1806 = vmatpush1.bf16.msra.mxu0 %v1805_v56 }
  0x9e   : > { %v659_v63 = vpop.permute.xlu1 %658  ;;  %v657_v5 = vpop.permute.xlu0 %656 }
  0x9f   : > { %v661_v6 = vsel %vm660_vm6, %v657_v5, %v659_v63  ;;  %v662_v11 = vsel %vm660_vm6, %v659_v63, %v657_v5 }
  0xa0   : > { %v684_v14 = vmul.f32 %v661_v6, %v2227_v61  ;;  %v685_v15 = vmul.f32 %v662_v11, %v2232_v62 }
  0xa2   : > { %v666_v17 = vpop.permute.xlu1 %665  ;;  %v664_v19 = vpop.permute.xlu0 %663  ;;  %v1807_v20 = vpack.c.bf16 %v685_v15, %v683_v13  ;;  %v1809_v21 = vpack.c.bf16 %v684_v14, %v682_v12 }
  0xa3   : > { %v668_v22 = vsel %vm667_vm7, %v664_v19, %v666_v17  ;;  %v669_v23 = vsel %vm667_vm7, %v666_v17, %v664_v19 }
  0xa4   : > { %v687_v24 = vmul.f32 %v669_v23, %v2246_v16  ;;  %1808 = vmatprep.subr.bf16.mxu0 %v1807_v20  ;;  %v686_v27 = vmul.f32 %v668_v22, %v2251_v18 }
  0xa5   : > { %1810 = vmatpush1.bf16.msra.mxu0 %v1809_v21 }
  0xa6   : > { %708 = vmatprep.subr.mxu0 %v687_v24 }
  0xa9   : > { %709 = vmatpush1.msra.mxu0 %v686_v27 }
  0xaa   : > { %1771 = vmatmul.mubr.msk.f32.vlgmr.msra.gmra.mrb[0].mxu0 %vm688_vm8, %v594_v28 }
  0xab   : > { %1300 = vmatprep.mubr.f32.mxu0 %v1952_v2 }
 0x17d   : > { %v2264_v31 = vpop.f32.mrb[0].mxu0 }
 0x17e   : > { %v2266_v32 = vpop.f32.mrb[1].mxu0  ;;  %v766_v33 = vmul.f32 %v2264_v31, %v2264_v31 }
 0x17f   : > { %v763_v34 = vadd.f32 %v2266_v32, %v2264_v31  ;;  %v767_v37 = vmul.f32 %v2266_v32, %v2266_v32 }
 0x181   : > { %764 = vadd.xlane.f32.xlu0 %v763_v34  ;;  %v768_v38 = vadd.f32 %v767_v37, %v766_v33 }
 0x183   : > { %769 = vadd.xlane.f32.xlu1 %v768_v38 }
 0x20e   : > { %v765_v3 = vpop.xlane.xlu0 %764 }
 0x20f   : > { %v772_v48 = vadd.f32 %v771_v44, %v765_v3  ;;  %v774_v49 = vmul.f32 %v773_v45, %v765_v3 }
 0x210   : > { %v770_v51 = vpop.xlane.xlu1 %769 }
 0x211   : > { %v785_v52 = vsel %vm781_vm11, %v772_v48, 0.0  ;;  %v794_v53 = vsel %vm2291_vm12, %v772_v48, 0.0  ;;  %v775_v54 = vadd.f32 %v774_v49, %v770_v51 }
 0x212   : > { %v787_v55 = vsel %vm786_vm13, %v785_v52, 0.0  ;;  %v795_v56 = vsel %vm786_vm13, %v794_v53, 0.0 }
 0x213   : > { %v788_v59 = vrot.slane %v787_v55, 4  ;;  %v796_v60 = vrot.slane %v795_v56, 4  ;;  %v778_v63 = vadd.f32 %v777_v50, %v775_v54 }
 0x215   : > { %v789_v5 = vadd.f32 %v788_v59, %v787_v55  ;;  %v797_v6 = vadd.f32 %v796_v60, %v795_v56  ;;  %v802_v11 = vsel %vm781_vm11, %v778_v63, 0.0  ;;  %v810_v12 = vsel %vm2291_vm12, %v778_v63, 0.0  ;;  %v596_v59 = vld [vmem:[%s2712_s4] sm:$0xff] }
 0x216   : > { %v803_v13 = vsel %vm786_vm13, %v802_v11, 0.0  ;;  %v811_v14 = vsel %vm786_vm13, %v810_v12, 0.0 }
 0x217   : > { %v790_v15 = vrot.slane %v789_v5, 2  ;;  %v798_v17 = vrot.slane %v797_v6, 2  ;;  %v804_v19 = vrot.slane %v803_v13, 4  ;;  %v812_v20 = vrot.slane %v811_v14, 4 }
 0x219   : > { %v791_v21 = vadd.f32 %v790_v15, %v789_v5  ;;  %v799_v22 = vadd.f32 %v798_v17, %v797_v6  ;;  %v805_v23 = vadd.f32 %v804_v19, %v803_v13  ;;  %v813_v24 = vadd.f32 %v812_v20, %v811_v14  ;;  %v597_v6 = vld [vmem:[%s2713_s5] sm:$0xff] }
 0x21b   : > { %v792_v27 = vrot.slane %v791_v21, 1  ;;  %v800_v28 = vrot.slane %v799_v22, 1  ;;  %v806_v33 = vrot.slane %v805_v23, 2  ;;  %v814_v34 = vrot.slane %v813_v24, 2 }
 0x21d   : > { %v793_v37 = vadd.f32 %v792_v27, %v791_v21  ;;  %v801_v38 = vadd.f32 %v800_v28, %v799_v22  ;;  %v807_v39 = vadd.f32 %v806_v33, %v805_v23  ;;  %v815_v44 = vadd.f32 %v814_v34, %v813_v24 }
 0x21f   : > { %v818_v45 = vsel %vm781_vm11, %v793_v37, %v801_v38  ;;  %v808_v46 = vrot.slane %v807_v39, 1  ;;  %v816_v3 = vrot.slane %v815_v44, 1 }
 0x220   : > { %v820_v48 = vmul.f32 0.001953125, %v818_v45 }
 0x221   : > { %v809_v49 = vadd.f32 %v808_v46, %v807_v39  ;;  %v817_v50 = vadd.f32 %v816_v3, %v815_v44 }
 0x222   : > { %v823_v52 = vmul.f32 %v820_v48, %v820_v48  ;;  %v829_v5 = vsub.f32 %v2277_v40, %v820_v48 }
 0x223   : > { %v821_v51 = vsel %vm781_vm11, %v809_v49, %v817_v50 }
 0x224   : > { %v822_v53 = vmul.f32 0.001953125, %v821_v51 }
 0x226   : > { %v824_v54 = vsub.f32 %v822_v53, %v823_v52 }
 0x228   : > { %v825_v55 = vmax.f32 %v824_v54, 0.0 }
 0x22a   : > { %v826_v56 = vadd.f32 1e-05, %v825_v55 }
 0x22c   : > { %1880 = vrsqrt.f32 %v826_v56 }
 0x236   : > { %v1881_v60 = vpop.eup %1880 }
 0x237   : > { %v828_v63 = vmul.f32 %v1881_v60, %v596_v59 }
 0x239   : > { %834 = vperm.xlu0 %1878, %v828_v63   ;;  %v830_v11 = vmul.f32 %v829_v5, %v828_v63 }
 0x23b   : > { %v831_v12 = vadd.f32 %v830_v11, %v597_v6 }
 0x23d   : > { %841 = vperm.xlu1 %1879, %v831_v12  }
 0x2b8   : > { %v835_v13 = vpop.permute.xlu0 %834 }
 0x2b9   : > { %v837_v14 = vmul.f32 %v835_v13, %v2264_v31  ;;  %v838_v15 = vmul.f32 %v835_v13, %v2266_v32 }
 0x2bc   : > { %v842_v17 = vpop.permute.xlu1 %841 }
 0x2bd   : > { %v844_v19 = vadd.f32 %v842_v17, %v837_v14  ;;  %v845_v20 = vadd.f32 %v842_v17, %v838_v15 }
 0x2bf   : > { %v846_v21 = vmul.f32 0.70710677, %v844_v19  ;;  %v847_v22 = vmul.f32 0.70710677, %v845_v20 }
 0x2c1   : > { %v852_v23 = vand.u32 2147483647, %v846_v21  ;;  %v853_v40 = vand.u32 2147483647, %v847_v22  ;;  %vm848_vm14 = vcmp.ge.f32.partialorder %v846_v21, 0.0  ;;  %vm849_vm15 = vcmp.ge.f32.partialorder %v847_v22, 0.0 }
 0x2c3   : > { %v854_v24 = vmul.f32 0.3275911, %v852_v23  ;;  %v855_v27 = vmul.f32 0.3275911, %v853_v40  ;;  %v878_v34 = vsub.f32 0.0, %v852_v23  ;;  %v879_v37 = vsub.f32 0.0, %v853_v40 }
 0x2c5   : > { %v856_v28 = vadd.f32 1.0, %v854_v24  ;;  %v857_v33 = vadd.f32 1.0, %v855_v27  ;;  %v880_v39 = vmul.f32 %v878_v34, %v852_v23  ;;  %v881_v32 = vmul.f32 %v879_v37, %v853_v40 }
 0x2c6   : > { %v1956_v40 = vmov -1.0   ;;  %v892_v37 = vmul.f32 0.5, %v844_v19 }
 0x2c7   : > { %1882 = vrcp.f32 %v856_v28  ;;  %v882_v48 = vmul.f32 1.442695, %v880_v39  ;;  %v884_v50 = vmul.f32 1.442695, %v881_v32  ;;  %v850_v24 = vsel %vm848_vm14, 1.0, %v1956_v40 }
 0x2c8   : > { %1884 = vrcp.f32 %v857_v33  ;;  %v851_v28 = vsel %vm849_vm15, 1.0, %v1956_v40  ;;  %v893_v32 = vmul.f32 0.5, %v845_v20 }
 0x2c9   : > { %1886 = vpow2.f32 %v882_v48 }
 0x2ca   : > { %1888 = vpow2.f32 %v884_v50 }
 0x2d1   : > { %v1883_v38 = vpop.eup %1882 }
 0x2d2   : > { %v1885_v31 = vpop.eup %1884  ;;  %v860_v44 = vmul.f32 1.0614054, %v1883_v38 }
 0x2d3   : > { %v861_v45 = vmul.f32 1.0614054, %v1885_v31  ;;  %v1887_v12 = vpop.eup %1886 }
 0x2d4   : > { %v1772_v46 = vadd.f32 -1.4531521, %v860_v44  ;;  %v1889_v14 = vpop.eup %1888 }
 0x2d5   : > { %v1773_v3 = vadd.f32 -1.4531521, %v861_v45 }
 0x2d6   : > { %v864_v49 = vmul.f32 %v1883_v38, %v1772_v46 }
 0x2d7   : > { %v865_v51 = vmul.f32 %v1885_v31, %v1773_v3 }
 0x2d8   : > { %v866_v52 = vadd.f32 1.4214138, %v864_v49 }
 0x2d9   : > { %v867_v53 = vadd.f32 1.4214138, %v865_v51 }
 0x2da   : > { %v868_v54 = vmul.f32 %v1883_v38, %v866_v52 }
 0x2db   : > { %v869_v55 = vmul.f32 %v1885_v31, %v867_v53 }
 0x2dc   : > { %v1774_v56 = vadd.f32 -0.28449672, %v868_v54 }
 0x2dd   : > { %v1775_v59 = vadd.f32 -0.28449672, %v869_v55 }
 0x2de   : > { %v872_v60 = vmul.f32 %v1883_v38, %v1774_v56 }
 0x2df   : > { %v873_v63 = vmul.f32 %v1885_v31, %v1775_v59 }
 0x2e0   : > { %v874_v5 = vadd.f32 0.2548296, %v872_v60 }
 0x2e1   : > { %v875_v6 = vadd.f32 0.2548296, %v873_v63 }
 0x2e2   : > { %v876_v11 = vmul.f32 %v1883_v38, %v874_v5 }
 0x2e3   : > { %v877_v13 = vmul.f32 %v1885_v31, %v875_v6 }
 0x2e4   : > { %v886_v15 = vmul.f32 %v1887_v12, %v876_v11 }
 0x2e5   : > { %v887_v17 = vmul.f32 %v1889_v14, %v877_v13 }
 0x2e6   : > { %v888_v23 = vsub.f32 1.0, %v886_v15 }
 0x2e7   : > { %v889_v27 = vsub.f32 1.0, %v887_v17 }
 0x2e8   : > { %v890_v33 = vmul.f32 %v888_v23, %v850_v24 }
 0x2e9   : > { %v891_v34 = vmul.f32 %v889_v27, %v851_v28 }
 0x2ea   : > { %v894_v39 = vadd.f32 1.0, %v890_v33 }
 0x2eb   : > { %v895_v44 = vadd.f32 1.0, %v891_v34 }
 0x2ec   : > { %v896_v38 = vmul.f32 %v894_v39, %v892_v37 }
 0x2ed   : > { %v897_v21 = vmul.f32 %v895_v44, %v893_v32 }
 0x2ee   : > { %916 = vrot.lane.b32.xlu0 %v896_v38, %s1949_s2  ;;  %898 = vrot.lane.b32.xlu1 %v896_v38, %s1947_s21  ;;  %v954_v32 = vmul.f32 %v896_v38, %v2182_v36 }
 0x2ef   : > { %v955_v44 = vmul.f32 %v897_v21, %v2177_v35 }
 0x2f2   : > { %922 = vrot.lane.b32.xlu0 %v896_v38, %s1950_s23  ;;  %900 = vrot.lane.b32.xlu1 %v897_v21, %s1947_s21 }
 0x2f6   : > { %928 = vrot.lane.b32.xlu0 %v896_v38, %s1951_s24  ;;  %904 = vrot.lane.b32.xlu1 %v896_v38, %s2745_s30 }
 0x2fa   : > { %934 = vrot.lane.b32.xlu0 %v896_v38, %s2746_s0  ;;  %906 = vrot.lane.b32.xlu1 %v897_v21, %s2745_s30 }
 0x2fe   : > { %940 = vrot.lane.b32.xlu0 %v896_v38, %s2747_s1  ;;  %910 = vrot.lane.b32.xlu1 %v896_v38, %s2748_s29 }
 0x302   : > { %912 = vrot.lane.b32.xlu1 %v897_v21, %s2748_s29 }
 0x306   : > { %918 = vrot.lane.b32.xlu1 %v897_v21, %s1949_s2 }
 0x30a   : > { %924 = vrot.lane.b32.xlu1 %v897_v21, %s1950_s23 }
 0x30e   : > { %930 = vrot.lane.b32.xlu1 %v897_v21, %s1951_s24 }
 0x312   : > { %936 = vrot.lane.b32.xlu1 %v897_v21, %s2746_s0 }
 0x316   : > { %942 = vrot.lane.b32.xlu1 %v897_v21, %s2747_s1 }
 0x360   : > { %v899_v19 = vpop.permute.xlu1 %898  ;;  %v917_v53 = vpop.permute.xlu0 %916 }
 0x364   : > { %v901_v20 = vpop.permute.xlu1 %900  ;;  %v923_v60 = vpop.permute.xlu0 %922 }
 0x365   : > { %v902_v31 = vsel %vm618_vm1, %v899_v19, %v901_v20  ;;  %v903_v45 = vsel %vm618_vm1, %v901_v20, %v899_v19 }
 0x366   : > { %v946_v49 = vmul.f32 %v903_v45, %v2119_v8  ;;  %v947_v51 = vmul.f32 %v902_v31, %v2124_v9 }
 0x368   : > { %v905_v22 = vpop.permute.xlu1 %904  ;;  %v929_v23 = vpop.permute.xlu0 %928 }
 0x36c   : > { %v907_v46 = vpop.permute.xlu1 %906  ;;  %v935_v31 = vpop.permute.xlu0 %934 }
 0x36d   : > { %v908_v3 = vsel %vm625_vm0, %v905_v22, %v907_v46  ;;  %v909_v48 = vsel %vm625_vm0, %v907_v46, %v905_v22 }
 0x36e   : > { %v948_v50 = vmul.f32 %v909_v48, %v2112_v7  ;;  %v949_v52 = vmul.f32 %v908_v3, %v2129_v10 }
 0x370   : > { %v911_v54 = vpop.permute.xlu1 %910  ;;  %v1811_v55 = vpack.c.bf16 %v949_v52, %v947_v51  ;;  %v1813_v56 = vpack.c.bf16 %v948_v50, %v946_v49  ;;  %v941_v52 = vpop.permute.xlu0 %940 }
 0x372   : > { %1812 = vmatprep.subr.bf16.mxu1 %v1811_v55 }
 0x373   : > { %1814 = vmatpush1.bf16.msra.mxu1 %v1813_v56 }
 0x374   : > { %v913_v59 = vpop.permute.xlu1 %912 }
 0x375   : > { %v914_v63 = vsel %vm632_vm2, %v911_v54, %v913_v59  ;;  %v915_v5 = vsel %vm632_vm2, %v913_v59, %v911_v54 }
 0x376   : > { %v950_v13 = vmul.f32 %v915_v5, %v2147_v25  ;;  %v951_v14 = vmul.f32 %v914_v63, %v2153_v26  ;;  %v598_v5 = vld [vmem:[%s2714_s6] sm:$0xff] }
 0x378   : > { %v919_v6 = vpop.permute.xlu1 %918 }
 0x379   : > { %v920_v11 = vsel %vm639_vm3, %v917_v53, %v919_v6  ;;  %v921_v12 = vsel %vm639_vm3, %v919_v6, %v917_v53 }
 0x37a   : > { %v952_v15 = vmul.f32 %v921_v12, %v2162_v29  ;;  %v953_v17 = vmul.f32 %v920_v11, %v2167_v30 }
 0x37c   : > { %v925_v24 = vpop.permute.xlu1 %924  ;;  %v1815_v27 = vpack.c.bf16 %v953_v17, %v951_v14  ;;  %v1817_v28 = vpack.c.bf16 %v952_v15, %v950_v13 }
 0x37d   : > { %v926_v33 = vsel %vm646_vm4, %v923_v60, %v925_v24  ;;  %v927_v34 = vsel %vm646_vm4, %v925_v24, %v923_v60 }
 0x37e   : > { %v956_v37 = vmul.f32 %v926_v33, %v2191_v41  ;;  %v957_v39 = vmul.f32 %v927_v34, %v2196_v42  ;;  %1816 = vmatprep.subr.bf16.mxu1 %v1815_v27 }
 0x37f   : > { %1818 = vmatpush1.bf16.msra.mxu1 %v1817_v28 }
 0x380   : > { %v931_v19 = vpop.permute.xlu1 %930  ;;  %v1819_v20 = vpack.c.bf16 %v957_v39, %v955_v44  ;;  %v1821_v22 = vpack.c.bf16 %v956_v37, %v954_v32 }
 0x381   : > { %v932_v45 = vsel %vm653_vm5, %v929_v23, %v931_v19  ;;  %v933_v46 = vsel %vm653_vm5, %v931_v19, %v929_v23 }
 0x382   : > { %1820 = vmatprep.subr.bf16.mxu1 %v1819_v20  ;;  %v958_v21 = vmul.f32 %v932_v45, %v2212_v57  ;;  %v959_v49 = vmul.f32 %v933_v46, %v2218_v58 }
 0x383   : > { %1822 = vmatpush1.bf16.msra.mxu1 %v1821_v22 }
 0x384   : > { %v937_v3 = vpop.permute.xlu1 %936 }
 0x385   : > { %v938_v48 = vsel %vm660_vm6, %v935_v31, %v937_v3  ;;  %v939_v38 = vsel %vm660_vm6, %v937_v3, %v935_v31 }
 0x386   : > { %v960_v50 = vmul.f32 %v938_v48, %v2227_v61  ;;  %v961_v51 = vmul.f32 %v939_v38, %v2232_v62 }
 0x388   : > { %v943_v53 = vpop.permute.xlu1 %942  ;;  %v1823_v54 = vpack.c.bf16 %v961_v51, %v959_v49  ;;  %v1825_v55 = vpack.c.bf16 %v960_v50, %v958_v21 }
 0x389   : > { %v945_v56 = vsel %vm667_vm7, %v943_v53, %v941_v52  ;;  %v944_v59 = vsel %vm667_vm7, %v941_v52, %v943_v53 }
 0x38a   : > { %v963_v60 = vmul.f32 %v945_v56, %v2246_v16  ;;  %1824 = vmatprep.subr.bf16.mxu1 %v1823_v54  ;;  %v962_v63 = vmul.f32 %v944_v59, %v2251_v18 }
 0x38b   : > { %1826 = vmatpush1.bf16.msra.mxu1 %v1825_v55 }
 0x38c   : > { %983 = vmatprep.subr.mxu1 %v963_v60 }
 0x38f   : > { %984 = vmatpush1.msra.mxu1 %v962_v63 }
 0x390   : > { %1776 = vmatmul.mubr.msk.f32.vlgmr.msra.gmra.mrb[0].mxu1 %vm688_vm8, %v598_v5 }
 0x391   : > { %1571 = vmatprep.mubr.f32.mxu1 %v1952_v2  ;;  %v599_v2 = vld [vmem:[%s2715_s7] sm:$0xff] }
 0x392   : > { %v1046_v17 = vmul.f32 256.0, %v599_v2  ;;  %v1048_v23 = vmul.f32 2.0, %v599_v2  ;;  %v1051_v24 = vmul.f32 %v599_v2, %v599_v2 }
 0x394   : > { %v1052_v34 = vmul.f32 256.0, %v1051_v24 }
 0x463   : > { %v2393_v6 = vpop.f32.mrb[0].mxu1 }
 0x464   : > { %v2395_v11 = vpop.f32.mrb[1].mxu1  ;;  %v1041_v12 = vmul.f32 %v2393_v6, %v2393_v6 }
 0x465   : > { %v1038_v13 = vadd.f32 %v2395_v11, %v2393_v6  ;;  %v1042_v14 = vmul.f32 %v2395_v11, %v2395_v11 }
 0x467   : > { %1039 = vadd.xlane.f32.xlu0 %v1038_v13  ;;  %v1043_v15 = vadd.f32 %v1042_v14, %v1041_v12 }
 0x469   : > { %1044 = vadd.xlane.f32.xlu1 %v1043_v15 }
 0x4f4   : > { %v1040_v27 = vpop.xlane.xlu0 %1039 }
 0x4f5   : > { %v1047_v28 = vadd.f32 %v1046_v17, %v1040_v27  ;;  %v1049_v33 = vmul.f32 %v1048_v23, %v1040_v27 }
 0x4f6   : > { %v1045_v37 = vpop.xlane.xlu1 %1044 }
 0x4f7   : > { %v1054_v39 = vsel %vm781_vm11, %v1047_v28, 0.0  ;;  %v1062_v44 = vsel %vm2291_vm12, %v1047_v28, 0.0  ;;  %v1050_v32 = vadd.f32 %v1049_v33, %v1045_v37 }
 0x4f8   : > { %v1055_v19 = vsel %vm786_vm13, %v1054_v39, 0.0  ;;  %v1063_v20 = vsel %vm786_vm13, %v1062_v44, 0.0 }
 0x4f9   : > { %v1056_v22 = vrot.slane %v1055_v19, 4  ;;  %v1064_v31 = vrot.slane %v1063_v20, 4  ;;  %v1053_v45 = vadd.f32 %v1052_v34, %v1050_v32 }
 0x4fb   : > { %v1057_v46 = vadd.f32 %v1056_v22, %v1055_v19  ;;  %v1065_v3 = vadd.f32 %v1064_v31, %v1063_v20  ;;  %v1070_v48 = vsel %vm781_vm11, %v1053_v45, 0.0  ;;  %v1078_v38 = vsel %vm2291_vm12, %v1053_v45, 0.0  ;;  %v600_v20 = vld [vmem:[%s2716_s8] sm:$0xff] }
 0x4fc   : > { %v1071_v21 = vsel %vm786_vm13, %v1070_v48, 0.0  ;;  %v1079_v49 = vsel %vm786_vm13, %v1078_v38, 0.0  ;;  %vm1323_vm12 = vcmp.ge.s32.totalorder %v2280_v43, 4 }
 0x4fd   : > { %v1058_v50 = vrot.slane %v1057_v46, 2  ;;  %v1066_v51 = vrot.slane %v1065_v3, 2  ;;  %v1072_v52 = vrot.slane %v1071_v21, 4  ;;  %v1080_v53 = vrot.slane %v1079_v49, 4 }
 0x4ff   : > { %v1059_v54 = vadd.f32 %v1058_v50, %v1057_v46  ;;  %v1067_v55 = vadd.f32 %v1066_v51, %v1065_v3  ;;  %v1073_v56 = vadd.f32 %v1072_v52, %v1071_v21  ;;  %v1081_v59 = vadd.f32 %v1080_v53, %v1079_v49  ;;  %v601_v46 = vld [vmem:[%s2717_s9] sm:$0xff] }
 0x501   : > { %v1060_v60 = vrot.slane %v1059_v54, 1  ;;  %v1068_v63 = vrot.slane %v1067_v55, 1  ;;  %v1074_v5 = vrot.slane %v1073_v56, 2  ;;  %v1082_v12 = vrot.slane %v1081_v59, 2 }
 0x503   : > { %v1061_v13 = vadd.f32 %v1060_v60, %v1059_v54  ;;  %v1069_v14 = vadd.f32 %v1068_v63, %v1067_v55  ;;  %v1075_v47 = vadd.f32 %v1074_v5, %v1073_v56  ;;  %v1083_v15 = vadd.f32 %v1082_v12, %v1081_v59 }
 0x505   : > { %v1086_v17 = vsel %vm781_vm11, %v1061_v13, %v1069_v14  ;;  %v1076_v23 = vrot.slane %v1075_v47, 1  ;;  %v1084_v24 = vrot.slane %v1083_v15, 1 }
 0x506   : > { %v1087_v27 = vmul.f32 0.001953125, %v1086_v17 }
 0x507   : > { %v1077_v28 = vadd.f32 %v1076_v23, %v1075_v47  ;;  %v1085_v33 = vadd.f32 %v1084_v24, %v1083_v15 }
 0x508   : > { %v1090_v37 = vmul.f32 %v1087_v27, %v1087_v27  ;;  %v1096_v45 = vsub.f32 %v599_v2, %v1087_v27 }
 0x509   : > { %v1088_v34 = vsel %vm781_vm11, %v1077_v28, %v1085_v33 }
 0x50a   : > { %v1089_v39 = vmul.f32 0.001953125, %v1088_v34 }
 0x50c   : > { %v1091_v44 = vsub.f32 %v1089_v39, %v1090_v37 }
 0x50e   : > { %v1092_v32 = vmax.f32 %v1091_v44, 0.0 }
 0x510   : > { %v1093_v19 = vadd.f32 1e-05, %v1092_v32 }
 0x512   : > { %1890 = vrsqrt.f32 %v1093_v19 }
 0x51c   : > { %v1891_v22 = vpop.eup %1890 }
 0x51d   : > { %v1095_v31 = vmul.f32 %v1891_v22, %v600_v20 }
 0x51f   : > { %1101 = vperm.xlu0 %1878, %v1095_v31   ;;  %v1097_v3 = vmul.f32 %v1096_v45, %v1095_v31 }
 0x521   : > { %v1098_v48 = vadd.f32 %v1097_v3, %v601_v46 }
 0x523   : > { %1108 = vperm.xlu1 %1879, %v1098_v48  }
 0x59e   : > { %v1102_v38 = vpop.permute.xlu0 %1101 }
 0x59f   : > { %v1104_v21 = vmul.f32 %v1102_v38, %v2393_v6  ;;  %v1105_v49 = vmul.f32 %v1102_v38, %v2395_v11 }
 0x5a2   : > { %v1109_v50 = vpop.permute.xlu1 %1108 }
 0x5a3   : > { %v1111_v51 = vadd.f32 %v1109_v50, %v1104_v21  ;;  %v1112_v52 = vadd.f32 %v1109_v50, %v1105_v49 }
 0x5a5   : > { %v1113_v53 = vadd.f32 %v1111_v51, %v2068_v0  ;;  %v1114_v2 = vadd.f32 %v1112_v52, %v2074_v1 }
 0x5a7   : > { %v1115_v54 = vmul.f32 0.70710677, %v1113_v53  ;;  %v1116_v55 = vmul.f32 0.70710677, %v1114_v2 }
 0x5a9   : > { %v1121_v56 = vand.u32 2147483647, %v1115_v54  ;;  %v1122_v59 = vand.u32 2147483647, %v1116_v55  ;;  %vm1117_vm9 = vcmp.ge.f32.partialorder %v1115_v54, 0.0  ;;  %vm1118_vm11 = vcmp.ge.f32.partialorder %v1116_v55, 0.0 }
 0x5aa   : > { %v1119_v51 = vsel %vm1117_vm9, 1.0, %v1956_v40 }
 0x5ab   : > { %v1123_v60 = vmul.f32 0.3275911, %v1121_v56  ;;  %v1124_v63 = vmul.f32 0.3275911, %v1122_v59  ;;  %v1147_v6 = vsub.f32 0.0, %v1121_v56  ;;  %v1148_v13 = vsub.f32 0.0, %v1122_v59 }
 0x5ad   : > { %v1125_v5 = vadd.f32 1.0, %v1123_v60  ;;  %v1126_v12 = vadd.f32 1.0, %v1124_v63  ;;  %v1149_v14 = vmul.f32 %v1147_v6, %v1121_v56  ;;  %v1150_v17 = vmul.f32 %v1148_v13, %v1122_v59 }
 0x5ae   : > { %v1120_v56 = vsel %vm1118_vm11, 1.0, %v1956_v40  ;;  %v1161_v63 = vmul.f32 0.5, %v1113_v53 }
 0x5af   : > { %1892 = vrcp.f32 %v1125_v5  ;;  %v1151_v24 = vmul.f32 1.442695, %v1149_v14  ;;  %v1153_v28 = vmul.f32 1.442695, %v1150_v17 }
 0x5b0   : > { %1894 = vrcp.f32 %v1126_v12  ;;  %v1162_v12 = vmul.f32 0.5, %v1114_v2 }
 0x5b1   : > { %1896 = vpow2.f32 %v1151_v24 }
 0x5b2   : > { %1898 = vpow2.f32 %v1153_v28 }
 0x5b9   : > { %v1893_v11 = vpop.eup %1892 }
 0x5ba   : > { %v1895_v47 = vpop.eup %1894  ;;  %v1129_v15 = vmul.f32 1.0614054, %v1893_v11 }
 0x5bb   : > { %v1130_v0 = vmul.f32 1.0614054, %v1895_v47  ;;  %v1897_v3 = vpop.eup %1896 }
 0x5bc   : > { %v1777_v23 = vadd.f32 -1.4531521, %v1129_v15  ;;  %v1899_v38 = vpop.eup %1898 }
 0x5bd   : > { %v1778_v1 = vadd.f32 -1.4531521, %v1130_v0 }
 0x5be   : > { %v1133_v27 = vmul.f32 %v1893_v11, %v1777_v23 }
 0x5bf   : > { %v1134_v33 = vmul.f32 %v1895_v47, %v1778_v1 }
 0x5c0   : > { %v1135_v34 = vadd.f32 1.4214138, %v1133_v27 }
 0x5c1   : > { %v1136_v37 = vadd.f32 1.4214138, %v1134_v33 }
 0x5c2   : > { %v1137_v39 = vmul.f32 %v1893_v11, %v1135_v34 }
 0x5c3   : > { %v1138_v44 = vmul.f32 %v1895_v47, %v1136_v37 }
 0x5c4   : > { %v1779_v32 = vadd.f32 -0.28449672, %v1137_v39 }
 0x5c5   : > { %v1780_v19 = vadd.f32 -0.28449672, %v1138_v44 }
 0x5c6   : > { %v1141_v20 = vmul.f32 %v1893_v11, %v1779_v32 }
 0x5c7   : > { %v1142_v22 = vmul.f32 %v1895_v47, %v1780_v19 }
 0x5c8   : > { %v1143_v31 = vadd.f32 0.2548296, %v1141_v20 }
 0x5c9   : > { %v1144_v45 = vadd.f32 0.2548296, %v1142_v22 }
 0x5ca   : > { %v1145_v46 = vmul.f32 %v1893_v11, %v1143_v31 }
 0x5cb   : > { %v1146_v48 = vmul.f32 %v1895_v47, %v1144_v45 }
 0x5cc   : > { %v1155_v21 = vmul.f32 %v1897_v3, %v1145_v46 }
 0x5cd   : > { %v1156_v49 = vmul.f32 %v1899_v38, %v1146_v48 }
 0x5ce   : > { %v1157_v50 = vsub.f32 1.0, %v1155_v21 }
 0x5cf   : > { %v1158_v52 = vsub.f32 1.0, %v1156_v49 }
 0x5d0   : > { %v1159_v59 = vmul.f32 %v1157_v50, %v1119_v51 }
 0x5d1   : > { %v1160_v60 = vmul.f32 %v1158_v52, %v1120_v56 }
 0x5d2   : > { %v1163_v5 = vadd.f32 1.0, %v1159_v59 }
 0x5d3   : > { %v1164_v6 = vadd.f32 1.0, %v1160_v60 }
 0x5d4   : > { %v1165_v13 = vmul.f32 %v1163_v5, %v1161_v63 }
 0x5d5   : > { %v1166_v11 = vmul.f32 %v1164_v6, %v1162_v12 }
 0x5d6   : > { %1167 = vrot.lane.b32.xlu0 %v1165_v13, %s1947_s21  ;;  %v1223_v38 = vmul.f32 %v1165_v13, %v2182_v36 }
 0x5d7   : > { %1169 = vrot.lane.b32.xlu1 %v1166_v11, %s1947_s21 }
 0x5da   : > { %1173 = vrot.lane.b32.xlu0 %v1165_v13, %s2745_s30 }
 0x5db   : > { %1175 = vrot.lane.b32.xlu1 %v1166_v11, %s2745_s30 }
 0x5de   : > { %1179 = vrot.lane.b32.xlu0 %v1165_v13, %s2748_s29 }
 0x5df   : > { %1181 = vrot.lane.b32.xlu1 %v1166_v11, %s2748_s29 }
 0x5e2   : > { %1185 = vrot.lane.b32.xlu0 %v1165_v13, %s1949_s2 }
 0x5e3   : > { %1187 = vrot.lane.b32.xlu1 %v1166_v11, %s1949_s2 }
 0x5e6   : > { %1191 = vrot.lane.b32.xlu0 %v1165_v13, %s1950_s23 }
 0x5e7   : > { %1193 = vrot.lane.b32.xlu1 %v1166_v11, %s1950_s23 }
 0x5ea   : > { %1197 = vrot.lane.b32.xlu0 %v1165_v13, %s1951_s24 }
 0x5eb   : > { %1199 = vrot.lane.b32.xlu1 %v1166_v11, %s1951_s24 }
 0x5ee   : > { %1203 = vrot.lane.b32.xlu0 %v1165_v13, %s2746_s0 }
 0x5ef   : > { %1205 = vrot.lane.b32.xlu1 %v1166_v11, %s2746_s0 }
 0x5f2   : > { %1209 = vrot.lane.b32.xlu0 %v1165_v13, %s2747_s1 }
 0x5f3   : > { %1211 = vrot.lane.b32.xlu1 %v1166_v11, %s2747_s1 }
 0x648   : > { %v1168_v53 = vpop.permute.xlu0 %1167 }
 0x649   : > { %v1170_v2 = vpop.permute.xlu1 %1169 }
 0x64a   : > { %v1171_v54 = vsel %vm618_vm1, %v1168_v53, %v1170_v2  ;;  %v1172_v55 = vsel %vm618_vm1, %v1170_v2, %v1168_v53 }
 0x64b   : > { %v1215_v0 = vmul.f32 %v1172_v55, %v2119_v8  ;;  %v1216_v23 = vmul.f32 %v1171_v54, %v2124_v9 }
 0x64c   : > { %v1174_v14 = vpop.permute.xlu0 %1173 }
 0x64d   : > { %v1176_v47 = vpop.permute.xlu1 %1175 }
 0x64e   : > { %v1177_v15 = vsel %vm625_vm0, %v1174_v14, %v1176_v47  ;;  %v1178_v17 = vsel %vm625_vm0, %v1176_v47, %v1174_v14  ;;  %v603_v14 = vld [vmem:[%s2719_s11] sm:$0xff] }
 0x64f   : > { %v1217_v1 = vmul.f32 %v1178_v17, %v2112_v7  ;;  %v1218_v24 = vmul.f32 %v1177_v15, %v2129_v10  ;;  %v1315_v47 = vmul.f32 256.0, %v603_v14  ;;  %v1317_v15 = vmul.f32 2.0, %v603_v14 }
 0x650   : > { %v1180_v27 = vpop.permute.xlu0 %1179  ;;  %v1320_v17 = vmul.f32 %v603_v14, %v603_v14 }
 0x651   : > { %v1829_v28 = vpack.c.bf16 %v1217_v1, %v1215_v0  ;;  %v1182_v33 = vpop.permute.xlu1 %1181  ;;  %v1827_v34 = vpack.c.bf16 %v1218_v24, %v1216_v23 }
 0x652   : > { %v1183_v37 = vsel %vm632_vm2, %v1180_v27, %v1182_v33  ;;  %v1184_v39 = vsel %vm632_vm2, %v1182_v33, %v1180_v27  ;;  %v1321_v24 = vmul.f32 256.0, %v1320_v17 }
 0x653   : > { %1828 = vmatprep.subr.bf16.mxu0 %v1827_v34  ;;  %v1219_v10 = vmul.f32 %v1184_v39, %v2147_v25  ;;  %v1220_v32 = vmul.f32 %v1183_v37, %v2153_v26 }
 0x654   : > { %1830 = vmatpush1.bf16.msra.mxu0 %v1829_v28  ;;  %v1186_v44 = vpop.permute.xlu0 %1185 }
 0x655   : > { %v1188_v8 = vpop.permute.xlu1 %1187 }
 0x656   : > { %v1189_v9 = vsel %vm639_vm3, %v1186_v44, %v1188_v8  ;;  %v1190_v7 = vsel %vm639_vm3, %v1188_v8, %v1186_v44 }
 0x657   : > { %v1221_v19 = vmul.f32 %v1190_v7, %v2162_v29  ;;  %v1222_v20 = vmul.f32 %v1189_v9, %v2167_v30  ;;  %v1224_v29 = vmul.f32 %v1166_v11, %v2177_v35 }
 0x658   : > { %v1192_v22 = vpop.permute.xlu0 %1191 }
 0x659   : > { %v1833_v31 = vpack.c.bf16 %v1221_v19, %v1219_v10  ;;  %v1194_v45 = vpop.permute.xlu1 %1193  ;;  %v1831_v46 = vpack.c.bf16 %v1222_v20, %v1220_v32 }
 0x65a   : > { %v1195_v3 = vsel %vm646_vm4, %v1192_v22, %v1194_v45  ;;  %v1196_v48 = vsel %vm646_vm4, %v1194_v45, %v1192_v22 }
 0x65b   : > { %v1225_v25 = vmul.f32 %v1195_v3, %v2191_v41  ;;  %v1226_v26 = vmul.f32 %v1196_v48, %v2196_v42  ;;  %1832 = vmatprep.subr.bf16.mxu0 %v1831_v46 }
 0x65c   : > { %1834 = vmatpush1.bf16.msra.mxu0 %v1833_v31  ;;  %v1198_v30 = vpop.permute.xlu0 %1197 }
 0x65d   : > { %v1837_v21 = vpack.c.bf16 %v1225_v25, %v1223_v38  ;;  %v1200_v49 = vpop.permute.xlu1 %1199  ;;  %v1835_v50 = vpack.c.bf16 %v1226_v26, %v1224_v29 }
 0x65e   : > { %v1201_v51 = vsel %vm653_vm5, %v1198_v30, %v1200_v49  ;;  %v1202_v52 = vsel %vm653_vm5, %v1200_v49, %v1198_v30 }
 0x65f   : > { %1836 = vmatprep.subr.bf16.mxu0 %v1835_v50  ;;  %v1227_v56 = vmul.f32 %v1201_v51, %v2212_v57  ;;  %v1228_v59 = vmul.f32 %v1202_v52, %v2218_v58  ;;  %v602_v58 = vld [vmem:[%s2718_s10] sm:$0xff] }
 0x660   : > { %1838 = vmatpush1.bf16.msra.mxu0 %v1837_v21  ;;  %v1204_v36 = vpop.permute.xlu0 %1203 }
 0x661   : > { %v1206_v41 = vpop.permute.xlu1 %1205 }
 0x662   : > { %v1207_v42 = vsel %vm660_vm6, %v1204_v36, %v1206_v41  ;;  %v1208_v35 = vsel %vm660_vm6, %v1206_v41, %v1204_v36 }
 0x663   : > { %v1229_v60 = vmul.f32 %v1207_v42, %v2227_v61  ;;  %v1230_v63 = vmul.f32 %v1208_v35, %v2232_v62 }
 0x664   : > { %v1210_v5 = vpop.permute.xlu0 %1209 }
 0x665   : > { %v1841_v12 = vpack.c.bf16 %v1229_v60, %v1227_v56  ;;  %v1212_v6 = vpop.permute.xlu1 %1211  ;;  %v1839_v13 = vpack.c.bf16 %v1230_v63, %v1228_v59 }
 0x666   : > { %v1214_v11 = vsel %vm667_vm7, %v1212_v6, %v1210_v5  ;;  %v1213_v53 = vsel %vm667_vm7, %v1210_v5, %v1212_v6 }
 0x667   : > { %v1232_v2 = vmul.f32 %v1214_v11, %v2246_v16  ;;  %1840 = vmatprep.subr.bf16.mxu0 %v1839_v13  ;;  %v1231_v57 = vmul.f32 %v1213_v53, %v2251_v18  ;;  %v604_v53 = vld [vmem:[%s2720_s12] sm:$0xff] }
 0x668   : > { %1842 = vmatpush1.bf16.msra.mxu0 %v1841_v12 }
 0x669   : > { %1252 = vmatprep.subr.mxu0 %v1232_v2 }
 0x66c   : > { %1253 = vmatpush1.msra.mxu0 %v1231_v57 }
 0x66d   : > { %1781 = vmatmul.mubr.msk.f32.vlgmr.msra.gmra.mrb[2].mxu0 %vm688_vm8, %v602_v58 }
 0x740   : > { %v2504_v61 = vpop.f32.mrb[2].mxu0 }
 0x741   : > { %v2506_v62 = vpop.f32.mrb[3].mxu0  ;;  %v1310_v54 = vmul.f32 %v2504_v61, %v2504_v61 }
 0x742   : > { %v1311_v16 = vmul.f32 %v2506_v62, %v2506_v62  ;;  %v1307_v18 = vadd.f32 %v2506_v62, %v2504_v61 }
 0x744   : > { %1308 = vadd.xlane.f32.xlu0 %v1307_v18  ;;  %v1312_v55 = vadd.f32 %v1311_v16, %v1310_v54  ;;  %v605_v54 = vld [vmem:[%s2721_s13] sm:$0xff] }
 0x746   : > { %1313 = vadd.xlane.f32.xlu1 %v1312_v55 }
 0x7d1   : > { %v1309_v0 = vpop.xlane.xlu0 %1308 }
 0x7d2   : > { %v1316_v23 = vadd.f32 %v1315_v47, %v1309_v0  ;;  %v1318_v1 = vmul.f32 %v1317_v15, %v1309_v0 }
 0x7d3   : > { %v1314_v27 = vpop.xlane.xlu1 %1313 }
 0x7d4   : > { %v1326_v28 = vsel %vm783_vm10, %v1316_v23, 0.0  ;;  %v1334_v33 = vsel %vm1323_vm12, %v1316_v23, 0.0  ;;  %v1319_v34 = vadd.f32 %v1318_v1, %v1314_v27 }
 0x7d5   : > { %v1327_v37 = vsel %vm786_vm13, %v1326_v28, 0.0  ;;  %v1335_v39 = vsel %vm786_vm13, %v1334_v33, 0.0 }
 0x7d6   : > { %v1328_v44 = vrot.slane %v1327_v37, 4  ;;  %v1336_v8 = vrot.slane %v1335_v39, 4  ;;  %v1322_v9 = vadd.f32 %v1321_v24, %v1319_v34 }
 0x7d8   : > { %v1329_v7 = vadd.f32 %v1328_v44, %v1327_v37  ;;  %v1337_v10 = vadd.f32 %v1336_v8, %v1335_v39  ;;  %v1342_v32 = vsel %vm783_vm10, %v1322_v9, 0.0  ;;  %v1350_v19 = vsel %vm1323_vm12, %v1322_v9, 0.0 }
 0x7d9   : > { %v1343_v20 = vsel %vm786_vm13, %v1342_v32, 0.0  ;;  %v1351_v22 = vsel %vm786_vm13, %v1350_v19, 0.0 }
 0x7da   : > { %v1330_v31 = vrot.slane %v1329_v7, 2  ;;  %v1338_v45 = vrot.slane %v1337_v10, 2  ;;  %v1344_v46 = vrot.slane %v1343_v20, 4  ;;  %v1352_v3 = vrot.slane %v1351_v22, 4 }
 0x7dc   : > { %v1331_v48 = vadd.f32 %v1330_v31, %v1329_v7  ;;  %v1339_v38 = vadd.f32 %v1338_v45, %v1337_v10  ;;  %v1345_v25 = vadd.f32 %v1344_v46, %v1343_v20  ;;  %v1353_v26 = vadd.f32 %v1352_v3, %v1351_v22 }
 0x7de   : > { %v1332_v29 = vrot.slane %v1331_v48, 1  ;;  %v1340_v30 = vrot.slane %v1339_v38, 1  ;;  %v1346_v21 = vrot.slane %v1345_v25, 2  ;;  %v1354_v49 = vrot.slane %v1353_v26, 2 }
 0x7e0   : > { %v1333_v50 = vadd.f32 %v1332_v29, %v1331_v48  ;;  %v1341_v51 = vadd.f32 %v1340_v30, %v1339_v38  ;;  %v1347_v52 = vadd.f32 %v1346_v21, %v1345_v25  ;;  %v1355_v36 = vadd.f32 %v1354_v49, %v1353_v26 }
 0x7e2   : > { %v1358_v41 = vsel %vm783_vm10, %v1333_v50, %v1341_v51  ;;  %v1348_v42 = vrot.slane %v1347_v52, 1  ;;  %v1356_v35 = vrot.slane %v1355_v36, 1 }
 0x7e3   : > { %v1360_v56 = vmul.f32 0.0009765625, %v1358_v41 }
 0x7e4   : > { %v1349_v59 = vadd.f32 %v1348_v42, %v1347_v52  ;;  %v1357_v60 = vadd.f32 %v1356_v35, %v1355_v36 }
 0x7e5   : > { %v1363_v5 = vmul.f32 %v1360_v56, %v1360_v56  ;;  %v1369_v58 = vsub.f32 %v603_v14, %v1360_v56 }
 0x7e6   : > { %v1361_v63 = vsel %vm783_vm10, %v1349_v59, %v1357_v60 }
 0x7e7   : > { %v1362_v12 = vmul.f32 0.0009765625, %v1361_v63 }
 0x7e9   : > { %v1364_v6 = vsub.f32 %v1362_v12, %v1363_v5 }
 0x7eb   : > { %v1365_v13 = vmax.f32 %v1364_v6, 0.0 }
 0x7ed   : > { %v1366_v11 = vadd.f32 1e-05, %v1365_v13 }
 0x7ef   : > { %1900 = vrsqrt.f32 %v1366_v11 }
 0x7f9   : > { %v1901_v2 = vpop.eup %1900 }
 0x7fa   : > { %v1368_v57 = vmul.f32 %v1901_v2, %v604_v53 }
 0x7fc   : > { %1374 = vperm.xlu0 %1878, %v1368_v57   ;;  %v1370_v16 = vmul.f32 %v1369_v58, %v1368_v57 }
 0x7fe   : > { %v1371_v18 = vadd.f32 %v1370_v16, %v605_v54 }
 0x800   : > { %1381 = vperm.xlu1 %1879, %v1371_v18  }
 0x87b   : > { %v1375_v55 = vpop.permute.xlu0 %1374 }
 0x87c   : > { %v1377_v47 = vmul.f32 %v1375_v55, %v2504_v61  ;;  %v1378_v15 = vmul.f32 %v1375_v55, %v2506_v62 }
 0x87f   : > { %v1382_v17 = vpop.permute.xlu1 %1381 }
 0x880   : > { %v1384_v0 = vadd.f32 %v1382_v17, %v1377_v47  ;;  %v1385_v23 = vadd.f32 %v1382_v17, %v1378_v15  ;;  %v1920_v17 = vld [vmem:[%s2741_s19] sm:$0xff] }
 0x882   : > { %v1386_v1 = vmul.f32 0.70710677, %v1384_v0  ;;  %v1387_v24 = vmul.f32 0.70710677, %v1385_v23  ;;  %v1432_v12 = vmul.f32 0.5, %v1384_v0  ;;  %v1433_v13 = vmul.f32 0.5, %v1385_v23 }
 0x883   : > { %v1921_v23 = vld [vmem:[%s2741_s19 + $0x8] sm:$0xff] }
 0x884   : > { %v1392_v27 = vand.u32 2147483647, %v1386_v1  ;;  %v1393_v14 = vand.u32 2147483647, %v1387_v24  ;;  %vm1388_vm14 = vcmp.ge.f32.partialorder %v1386_v1, 0.0  ;;  %vm1389_vm15 = vcmp.ge.f32.partialorder %v1387_v24, 0.0 }
 0x885   : > { %v1390_v56 = vsel %vm1388_vm14, 1.0, %v1956_v40  ;;  %v1391_v60 = vsel %vm1389_vm15, 1.0, %v1956_v40  ;;  %v1922_v24 = vld [vmem:[%s2741_s19 + $0x10] sm:$0xff] }
 0x886   : > { %v1394_v28 = vmul.f32 0.3275911, %v1392_v27  ;;  %v1395_v33 = vmul.f32 0.3275911, %v1393_v14  ;;  %v1418_v39 = vsub.f32 0.0, %v1392_v27  ;;  %v1419_v44 = vsub.f32 0.0, %v1393_v14 }
 0x888   : > { %v1396_v34 = vadd.f32 1.0, %v1394_v28  ;;  %v1397_v37 = vadd.f32 1.0, %v1395_v33  ;;  %v1420_v9 = vmul.f32 %v1418_v39, %v1392_v27  ;;  %v1421_v62 = vmul.f32 %v1419_v44, %v1393_v14  ;;  %v1923_v14 = vld [vmem:[%s2741_s19 + $0x18] sm:$0xff] }
 0x88a   : > { %1902 = vrcp.f32 %v1396_v34  ;;  %v1422_v20 = vmul.f32 1.442695, %v1420_v9  ;;  %v1424_v31 = vmul.f32 1.442695, %v1421_v62 }
 0x88b   : > { %1904 = vrcp.f32 %v1397_v37 }
 0x88c   : > { %1906 = vpow2.f32 %v1422_v20 }
 0x88d   : > { %1908 = vpow2.f32 %v1424_v31 }
 0x894   : > { %v1903_v8 = vpop.eup %1902 }
 0x895   : > { %v1905_v61 = vpop.eup %1904  ;;  %v1400_v7 = vmul.f32 1.0614054, %v1903_v8 }
 0x896   : > { %v1401_v10 = vmul.f32 1.0614054, %v1905_v61  ;;  %v1907_v51 = vpop.eup %1906 }
 0x897   : > { %v1782_v32 = vadd.f32 -1.4531521, %v1400_v7  ;;  %v1909_v36 = vpop.eup %1908 }
 0x898   : > { %v1783_v19 = vadd.f32 -1.4531521, %v1401_v10  ;;  %v1924_v10 = vld [vmem:[%s2741_s19 + $0x20] sm:$0xff] }
 0x899   : > { %v1404_v22 = vmul.f32 %v1903_v8, %v1782_v32 }
 0x89a   : > { %v1405_v45 = vmul.f32 %v1905_v61, %v1783_v19  ;;  %v1925_v19 = vld [vmem:[%s2741_s19 + $0x28] sm:$0xff] }
 0x89b   : > { %v1406_v46 = vadd.f32 1.4214138, %v1404_v22  ;;  %v1926_v22 = vld [vmem:[%s2741_s19 + $0x30] sm:$0xff] }
 0x89c   : > { %v1407_v3 = vadd.f32 1.4214138, %v1405_v45  ;;  %v1927_v45 = vld [vmem:[%s2741_s19 + $0x38] sm:$0xff] }
 0x89d   : > { %v1408_v48 = vmul.f32 %v1903_v8, %v1406_v46 }
 0x89e   : > { %v1409_v38 = vmul.f32 %v1905_v61, %v1407_v3 }
 0x89f   : > { %v1784_v25 = vadd.f32 -0.28449672, %v1408_v48 }
 0x8a0   : > { %v1785_v26 = vadd.f32 -0.28449672, %v1409_v38 }
 0x8a1   : > { %v1412_v29 = vmul.f32 %v1903_v8, %v1784_v25 }
 0x8a2   : > { %v1413_v30 = vmul.f32 %v1905_v61, %v1785_v26 }
 0x8a3   : > { %v1414_v21 = vadd.f32 0.2548296, %v1412_v29 }
 0x8a4   : > { %v1415_v49 = vadd.f32 0.2548296, %v1413_v30  ;;  %v1928_v30 = vld [vmem:[%s2741_s19 + $0x40] sm:$0xff] }
 0x8a5   : > { %v1416_v50 = vmul.f32 %v1903_v8, %v1414_v21 }
 0x8a6   : > { %v1417_v52 = vmul.f32 %v1905_v61, %v1415_v49  ;;  %v1929_v49 = vld [vmem:[%s2741_s19 + $0x50] sm:$0xff] }
 0x8a7   : > { %v1426_v41 = vmul.f32 %v1907_v51, %v1416_v50  ;;  %v1930_v51 = vld [vmem:[%s2741_s19 + $0x58] sm:$0xff] }
 0x8a8   : > { %v1427_v42 = vmul.f32 %v1909_v36, %v1417_v52  ;;  %v1931_v36 = vld [vmem:[%s2741_s19 + $0x48] sm:$0xff] }
 0x8a9   : > { %v1428_v35 = vsub.f32 1.0, %v1426_v41 }
 0x8aa   : > { %v1429_v59 = vsub.f32 1.0, %v1427_v42 }
 0x8ab   : > { %v1430_v63 = vmul.f32 %v1428_v35, %v1390_v56 }
 0x8ac   : > { %v1431_v5 = vmul.f32 %v1429_v59, %v1391_v60 }
 0x8ad   : > { %v1434_v6 = vadd.f32 1.0, %v1430_v63 }
 0x8ae   : > { %v1435_v11 = vadd.f32 1.0, %v1431_v5 }
 0x8af   : > { %v1436_v53 = vmul.f32 %v1434_v6, %v1432_v12 }
 0x8b0   : > { %v2544_v2 = vmul.f32 %v1435_v11, %v1433_v13  ;;  %v1932_v11 = vld [vmem:[%s2741_s19 + $0x60] sm:$0xff] }
 0x8b1   : > { %1438 = vrot.lane.b32.xlu0 %v1436_v53, %s1947_s21  ;;  %v1494_v21 = vmul.f32 %v1928_v30, %v1436_v53 }
 0x8b2   : > { %1440 = vrot.lane.b32.xlu1 %v2544_v2, %s1947_s21  ;;  %v1495_v41 = vmul.f32 %v1931_v36, %v2544_v2 }
 0x8b5   : > { %1444 = vrot.lane.b32.xlu0 %v1436_v53, %s2745_s30 }
 0x8b6   : > { %1446 = vrot.lane.b32.xlu1 %v2544_v2, %s2745_s30 }
 0x8b9   : > { %1450 = vrot.lane.b32.xlu0 %v1436_v53, %s2748_s29 }
 0x8ba   : > { %1452 = vrot.lane.b32.xlu1 %v2544_v2, %s2748_s29 }
 0x8bd   : > { %1456 = vrot.lane.b32.xlu0 %v1436_v53, %s1949_s2 }
 0x8be   : > { %1458 = vrot.lane.b32.xlu1 %v2544_v2, %s1949_s2 }
 0x8c1   : > { %1462 = vrot.lane.b32.xlu0 %v1436_v53, %s1950_s23 }
 0x8c2   : > { %1464 = vrot.lane.b32.xlu1 %v2544_v2, %s1950_s23 }
 0x8c5   : > { %1468 = vrot.lane.b32.xlu0 %v1436_v53, %s1951_s24 }
 0x8c6   : > { %1470 = vrot.lane.b32.xlu1 %v2544_v2, %s1951_s24 }
 0x8c9   : > { %1474 = vrot.lane.b32.xlu0 %v1436_v53, %s2746_s0 }
 0x8ca   : > { %1476 = vrot.lane.b32.xlu1 %v2544_v2, %s2746_s0 }
 0x8cd   : > { %1480 = vrot.lane.b32.xlu0 %v1436_v53, %s2747_s1 }
 0x8ce   : > { %1482 = vrot.lane.b32.xlu1 %v2544_v2, %s2747_s1  ;;  %v1933_v2 = vld [vmem:[%s2741_s19 + $0x68] sm:$0xff] }
 0x923   : > { %v1439_v57 = vpop.permute.xlu0 %1438 }
 0x924   : > { %v1441_v58 = vpop.permute.xlu1 %1440 }
 0x925   : > { %v1442_v54 = vsel %vm618_vm1, %v1439_v57, %v1441_v58  ;;  %v1443_v16 = vsel %vm618_vm1, %v1441_v58, %v1439_v57  ;;  %v1934_v58 = vld [vmem:[%s2741_s19 + $0x70] sm:$0xff] }
 0x926   : > { %v1486_v0 = vmul.f32 %v1920_v17, %v1443_v16  ;;  %v1487_v1 = vmul.f32 %v1921_v23, %v1442_v54  ;;  %v1935_v16 = vld [vmem:[%s2741_s19 + $0x78] sm:$0xff] }
 0x927   : > { %v1445_v18 = vpop.permute.xlu0 %1444 }
 0x928   : > { %v1447_v55 = vpop.permute.xlu1 %1446 }
 0x929   : > { %v1448_v47 = vsel %vm625_vm0, %v1445_v18, %v1447_v55  ;;  %v1449_v15 = vsel %vm625_vm0, %v1447_v55, %v1445_v18 }
 0x92a   : > { %v1488_v27 = vmul.f32 %v1922_v24, %v1449_v15  ;;  %v1489_v28 = vmul.f32 %v1923_v14, %v1448_v47 }
 0x92b   : > { %v1451_v33 = vpop.permute.xlu0 %1450 }
 0x92c   : > { %v1845_v34 = vpack.c.bf16 %v1488_v27, %v1486_v0  ;;  %v1453_v37 = vpop.permute.xlu1 %1452  ;;  %v1843_v39 = vpack.c.bf16 %v1489_v28, %v1487_v1  ;;  %v1936_v1 = vld [vmem:[%s2741_s19 + $0x88] sm:$0xff]  ;;  %v1937_v27 = vld [vmem:[%s2741_s19 + $0x80] sm:$0xff] }
 0x92d   : > { %v1454_v44 = vsel %vm632_vm2, %v1451_v33, %v1453_v37  ;;  %v1455_v8 = vsel %vm632_vm2, %v1453_v37, %v1451_v33  ;;  %v606_v28 = vld [vmem:[%s2722_s14] sm:$0xff] }
 0x92e   : > { %1844 = vmatprep.subr.bf16.mxu1 %v1843_v39  ;;  %v1490_v32 = vmul.f32 %v1924_v10, %v1455_v8  ;;  %v1491_v20 = vmul.f32 %v1925_v19, %v1454_v44  ;;  %v607_v8 = vld [vmem:[%s2723_s15] sm:$0xff] }
 0x92f   : > { %1846 = vmatpush1.bf16.msra.mxu1 %v1845_v34  ;;  %v1457_v9 = vpop.permute.xlu0 %1456 }
 0x930   : > { %v1459_v61 = vpop.permute.xlu1 %1458 }
 0x931   : > { %v1460_v7 = vsel %vm639_vm3, %v1457_v9, %v1459_v61  ;;  %v1461_v62 = vsel %vm639_vm3, %v1459_v61, %v1457_v9  ;;  %v1586_v9 = vmul.f32 256.0, %v607_v8  ;;  %v1588_v61 = vmul.f32 2.0, %v607_v8 }
 0x932   : > { %v1492_v31 = vmul.f32 %v1926_v22, %v1461_v62  ;;  %v1493_v46 = vmul.f32 %v1927_v45, %v1460_v7  ;;  %v1591_v7 = vmul.f32 %v607_v8, %v607_v8 }
 0x933   : > { %v1463_v3 = vpop.permute.xlu0 %1462 }
 0x934   : > { %v1849_v48 = vpack.c.bf16 %v1492_v31, %v1490_v32  ;;  %v1465_v38 = vpop.permute.xlu1 %1464  ;;  %v1847_v25 = vpack.c.bf16 %v1493_v46, %v1491_v20  ;;  %v1592_v19 = vmul.f32 256.0, %v1591_v7 }
 0x935   : > { %v1466_v26 = vsel %vm646_vm4, %v1463_v3, %v1465_v38  ;;  %v1467_v29 = vsel %vm646_vm4, %v1465_v38, %v1463_v3 }
 0x936   : > { %v1496_v50 = vmul.f32 %v1929_v49, %v1466_v26  ;;  %v1497_v52 = vmul.f32 %v1930_v51, %v1467_v29  ;;  %1848 = vmatprep.subr.bf16.mxu1 %v1847_v25 }
 0x937   : > { %1850 = vmatpush1.bf16.msra.mxu1 %v1849_v48  ;;  %v1469_v42 = vpop.permute.xlu0 %1468 }
 0x938   : > { %v1853_v35 = vpack.c.bf16 %v1496_v50, %v1494_v21  ;;  %v1471_v56 = vpop.permute.xlu1 %1470  ;;  %v1851_v59 = vpack.c.bf16 %v1497_v52, %v1495_v41 }
 0x939   : > { %v1472_v60 = vsel %vm653_vm5, %v1469_v42, %v1471_v56  ;;  %v1473_v63 = vsel %vm653_vm5, %v1471_v56, %v1469_v42 }
 0x93a   : > { %1852 = vmatprep.subr.bf16.mxu1 %v1851_v59  ;;  %v1498_v53 = vmul.f32 %v1932_v11, %v1472_v60  ;;  %v1499_v57 = vmul.f32 %v1933_v2, %v1473_v63 }
 0x93b   : > { %1854 = vmatpush1.bf16.msra.mxu1 %v1853_v35  ;;  %v1475_v5 = vpop.permute.xlu0 %1474 }
 0x93c   : > { %v1477_v12 = vpop.permute.xlu1 %1476 }
 0x93d   : > { %v1478_v6 = vsel %vm660_vm6, %v1475_v5, %v1477_v12  ;;  %v1479_v13 = vsel %vm660_vm6, %v1477_v12, %v1475_v5 }
 0x93e   : > { %v1500_v54 = vmul.f32 %v1934_v58, %v1478_v6  ;;  %v1501_v18 = vmul.f32 %v1935_v16, %v1479_v13 }
 0x93f   : > { %v1481_v55 = vpop.permute.xlu0 %1480 }
 0x940   : > { %v1857_v47 = vpack.c.bf16 %v1500_v54, %v1498_v53  ;;  %v1483_v15 = vpop.permute.xlu1 %1482  ;;  %v1855_v17 = vpack.c.bf16 %v1501_v18, %v1499_v57 }
 0x941   : > { %v1485_v0 = vsel %vm667_vm7, %v1483_v15, %v1481_v55  ;;  %v1484_v23 = vsel %vm667_vm7, %v1481_v55, %v1483_v15 }
 0x942   : > { %v1503_v24 = vmul.f32 %v1936_v1, %v1485_v0  ;;  %1856 = vmatprep.subr.bf16.mxu1 %v1855_v17  ;;  %v1502_v14 = vmul.f32 %v1937_v27, %v1484_v23  ;;  %v608_v1 = vld [vmem:[%s2724_s16] sm:$0xff] }
 0x943   : > { %1858 = vmatpush1.bf16.msra.mxu1 %v1857_v47 }
 0x944   : > { %1523 = vmatprep.subr.mxu1 %v1503_v24 }
 0x947   : > { %1524 = vmatpush1.msra.mxu1 %v1502_v14 }
 0x948   : > { %1786 = vmatmul.mubr.msk.f32.vlgmr.msra.gmra.mrb[2].mxu1 %vm688_vm8, %v606_v28  ;;  %v609_v28 = vld [vmem:[%s2725_s17] sm:$0xff] }
 0xa1b   : > { %v2661_v4 = vpop.f32.mrb[2].mxu1 }
 0xa1c   : > { %v2663_v33 = vpop.f32.mrb[3].mxu1  ;;  %v1581_v34 = vmul.f32 %v2661_v4, %v2661_v4 }
 0xa1d   : > { %v1582_v37 = vmul.f32 %v2663_v33, %v2663_v33  ;;  %v1578_v39 = vadd.f32 %v2663_v33, %v2661_v4 }
 0xa1f   : > { %1579 = vadd.xlane.f32.xlu0 %v1578_v39  ;;  %v1583_v44 = vadd.f32 %v1582_v37, %v1581_v34 }
 0xa21   : > { %1584 = vadd.xlane.f32.xlu1 %v1583_v44 }
 0xaac   : > { %v1580_v62 = vpop.xlane.xlu0 %1579 }
 0xaad   : > { %v1587_v10 = vadd.f32 %v1586_v9, %v1580_v62  ;;  %v1589_v32 = vmul.f32 %v1588_v61, %v1580_v62 }
 0xaae   : > { %v1585_v20 = vpop.xlane.xlu1 %1584 }
 0xaaf   : > { %v1594_v22 = vsel %vm783_vm10, %v1587_v10, 0.0  ;;  %v1602_v31 = vsel %vm1323_vm12, %v1587_v10, 0.0  ;;  %v1590_v45 = vadd.f32 %v1589_v32, %v1585_v20 }
 0xab0   : > { %v1595_v46 = vsel %vm786_vm13, %v1594_v22, 0.0  ;;  %v1603_v3 = vsel %vm786_vm13, %v1602_v31, 0.0 }
 0xab1   : > { %v1596_v48 = vrot.slane %v1595_v46, 4  ;;  %v1604_v38 = vrot.slane %v1603_v3, 4  ;;  %v1593_v25 = vadd.f32 %v1592_v19, %v1590_v45 }
 0xab3   : > { %v1597_v26 = vadd.f32 %v1596_v48, %v1595_v46  ;;  %v1605_v29 = vadd.f32 %v1604_v38, %v1603_v3  ;;  %v1610_v30 = vsel %vm783_vm10, %v1593_v25, 0.0  ;;  %v1618_v21 = vsel %vm1323_vm12, %v1593_v25, 0.0 }
 0xab4   : > { %v1611_v49 = vsel %vm786_vm13, %v1610_v30, 0.0  ;;  %v1619_v50 = vsel %vm786_vm13, %v1618_v21, 0.0 }
 0xab5   : > { %v1598_v51 = vrot.slane %v1597_v26, 2  ;;  %v1606_v52 = vrot.slane %v1605_v29, 2  ;;  %v1612_v36 = vrot.slane %v1611_v49, 4  ;;  %v1620_v41 = vrot.slane %v1619_v50, 4 }
 0xab7   : > { %v1599_v42 = vadd.f32 %v1598_v51, %v1597_v26  ;;  %v1607_v35 = vadd.f32 %v1606_v52, %v1605_v29  ;;  %v1613_v56 = vadd.f32 %v1612_v36, %v1611_v49  ;;  %v1621_v59 = vadd.f32 %v1620_v41, %v1619_v50 }
 0xab9   : > { %v1600_v60 = vrot.slane %v1599_v42, 1  ;;  %v1608_v63 = vrot.slane %v1607_v35, 1  ;;  %v1614_v5 = vrot.slane %v1613_v56, 2  ;;  %v1622_v12 = vrot.slane %v1621_v59, 2 }
 0xabb   : > { %v1601_v6 = vadd.f32 %v1600_v60, %v1599_v42  ;;  %v1609_v13 = vadd.f32 %v1608_v63, %v1607_v35  ;;  %v1615_v11 = vadd.f32 %v1614_v5, %v1613_v56  ;;  %v1623_v53 = vadd.f32 %v1622_v12, %v1621_v59 }
 0xabd   : > { %v1626_v2 = vsel %vm783_vm10, %v1601_v6, %v1609_v13  ;;  %v1616_v57 = vrot.slane %v1615_v11, 1  ;;  %v1624_v58 = vrot.slane %v1623_v53, 1 }
 0xabe   : > { %v1627_v54 = vmul.f32 0.0009765625, %v1626_v2 }
 0xabf   : > { %v1617_v16 = vadd.f32 %v1616_v57, %v1615_v11  ;;  %v1625_v18 = vadd.f32 %v1624_v58, %v1623_v53 }
 0xac0   : > { %v1630_v47 = vmul.f32 %v1627_v54, %v1627_v54  ;;  %v1636_v14 = vsub.f32 %v607_v8, %v1627_v54 }
 0xac1   : > { %v1628_v55 = vsel %vm783_vm10, %v1617_v16, %v1625_v18 }
 0xac2   : > { %v1629_v15 = vmul.f32 0.0009765625, %v1628_v55 }
 0xac4   : > { %v1631_v17 = vsub.f32 %v1629_v15, %v1630_v47 }
 0xac6   : > { %v1632_v0 = vmax.f32 %v1631_v17, 0.0 }
 0xac8   : > { %v1633_v23 = vadd.f32 1e-05, %v1632_v0 }
 0xaca   : > { %1910 = vrsqrt.f32 %v1633_v23 }
 0xad4   : > { %v1911_v24 = vpop.eup %1910 }
 0xad5   : > { %v1635_v27 = vmul.f32 %v1911_v24, %v608_v1 }
 0xad7   : > { %1641 = vperm.xlu0 %1878, %v1635_v27   ;;  %v1637_v43 = vmul.f32 %v1636_v14, %v1635_v27 }
 0xad9   : > { %v1638_v34 = vadd.f32 %v1637_v43, %v609_v28 }
 0xadb   : > { %1648 = vperm.xlu1 %1879, %v1638_v34  }
 0xb56   : > { %v1642_v37 = vpop.permute.xlu0 %1641 }
 0xb57   : > { %v1644_v39 = vmul.f32 %v1642_v37, %v2661_v4  ;;  %v1645_v44 = vmul.f32 %v1642_v37, %v2663_v33 }
 0xb5a   : > { %v1649_v9 = vpop.permute.xlu1 %1648 }
 0xb5b   : > { %v1651_v61 = vadd.f32 %v1649_v9, %v1644_v39  ;;  %v1652_v7 = vadd.f32 %v1649_v9, %v1645_v44 }
 0xb5d   : > { %v1653_v62 = vmul.f32 0.70710677, %v1651_v61  ;;  %v1654_v10 = vmul.f32 0.70710677, %v1652_v7  ;;  %v1699_v55 = vmul.f32 0.5, %v1651_v61  ;;  %v1700_v15 = vmul.f32 0.5, %v1652_v7 }
 0xb5f   : > { %v1659_v32 = vand.u32 2147483647, %v1653_v62  ;;  %v1660_v8 = vand.u32 2147483647, %v1654_v10  ;;  %vm1655_vm0 = vcmp.ge.f32.partialorder %v1653_v62, 0.0  ;;  %vm1656_vm1 = vcmp.ge.f32.partialorder %v1654_v10, 0.0 }
 0xb60   : > { %v1657_v57 = vsel %vm1655_vm0, 1.0, %v1956_v40  ;;  %v1658_v54 = vsel %vm1656_vm1, 1.0, %v1956_v40 }
 0xb61   : > { %v1661_v19 = vmul.f32 0.3275911, %v1659_v32  ;;  %v1662_v20 = vmul.f32 0.3275911, %v1660_v8  ;;  %v1685_v45 = vsub.f32 0.0, %v1659_v32  ;;  %v1686_v46 = vsub.f32 0.0, %v1660_v8 }
 0xb63   : > { %v1663_v22 = vadd.f32 1.0, %v1661_v19  ;;  %v1664_v31 = vadd.f32 1.0, %v1662_v20  ;;  %v1687_v48 = vmul.f32 %v1685_v45, %v1659_v32  ;;  %v1688_v33 = vmul.f32 %v1686_v46, %v1660_v8 }
 0xb65   : > { %1912 = vrcp.f32 %v1663_v22  ;;  %v1689_v30 = vmul.f32 1.442695, %v1687_v48  ;;  %v1691_v49 = vmul.f32 1.442695, %v1688_v33 }
 0xb66   : > { %1914 = vrcp.f32 %v1664_v31 }
 0xb67   : > { %1916 = vpow2.f32 %v1689_v30 }
 0xb68   : > { %1918 = vpow2.f32 %v1691_v49 }
 0xb6f   : > { %v1913_v3 = vpop.eup %1912 }
 0xb70   : > { %v1915_v4 = vpop.eup %1914  ;;  %v1667_v38 = vmul.f32 1.0614054, %v1913_v3 }
 0xb71   : > { %v1668_v25 = vmul.f32 1.0614054, %v1915_v4  ;;  %v1917_v12 = vpop.eup %1916 }
 0xb72   : > { %v1787_v26 = vadd.f32 -1.4531521, %v1667_v38  ;;  %v1919_v13 = vpop.eup %1918 }
 0xb73   : > { %v1788_v29 = vadd.f32 -1.4531521, %v1668_v25 }
 0xb74   : > { %v1671_v21 = vmul.f32 %v1913_v3, %v1787_v26 }
 0xb75   : > { %v1672_v50 = vmul.f32 %v1915_v4, %v1788_v29 }
 0xb76   : > { %v1673_v51 = vadd.f32 1.4214138, %v1671_v21 }
 0xb77   : > { %v1674_v52 = vadd.f32 1.4214138, %v1672_v50 }
 0xb78   : > { %v1675_v36 = vmul.f32 %v1913_v3, %v1673_v51 }
 0xb79   : > { %v1676_v41 = vmul.f32 %v1915_v4, %v1674_v52 }
 0xb7a   : > { %v1789_v42 = vadd.f32 -0.28449672, %v1675_v36 }
 0xb7b   : > { %v1790_v35 = vadd.f32 -0.28449672, %v1676_v41 }
 0xb7c   : > { %v1679_v56 = vmul.f32 %v1913_v3, %v1789_v42 }
 0xb7d   : > { %v1680_v59 = vmul.f32 %v1915_v4, %v1790_v35 }
 0xb7e   : > { %v1681_v60 = vadd.f32 0.2548296, %v1679_v56 }
 0xb7f   : > { %v1682_v63 = vadd.f32 0.2548296, %v1680_v59 }
 0xb80   : > { %v1683_v5 = vmul.f32 %v1913_v3, %v1681_v60 }
 0xb81   : > { %v1684_v6 = vmul.f32 %v1915_v4, %v1682_v63 }
 0xb82   : > { %v1693_v11 = vmul.f32 %v1917_v12, %v1683_v5 }
 0xb83   : > { %v1694_v53 = vmul.f32 %v1919_v13, %v1684_v6 }
 0xb84   : > { %v1695_v2 = vsub.f32 1.0, %v1693_v11 }
 0xb85   : > { %v1696_v58 = vsub.f32 1.0, %v1694_v53 }
 0xb86   : > { %v1697_v16 = vmul.f32 %v1695_v2, %v1657_v57 }
 0xb87   : > { %v1698_v18 = vmul.f32 %v1696_v58, %v1658_v54 }
 0xb88   : > { %v1701_v47 = vadd.f32 1.0, %v1697_v16 }
 0xb89   : > { %v1702_v17 = vadd.f32 1.0, %v1698_v18 }
 0xb8a   : > { %v1703_v0 = vmul.f32 %v1701_v47, %v1699_v55 }
 0xb8b   : > { %v1704_v23 = vmul.f32 %v1702_v17, %v1700_v15 }
 0xb8c   : > { %1705 = vst [vmem:[%s575_s26] sm:$0xff] %v1703_v0 }
 0xb8d   : > { %1706 = vst [vmem:[%s575_s26 + $0x8] sm:$0xff] %v1704_v23 }
 0xb8e PF: > { %s28_s27 = sadd.s32 1, %s1944_s27  }
 0xb8f   : > { %p25_p4 = scmp.ge.s32.totalorder %s28_s27, 4  }
 0xb91   :  { %27 = sbr.rel (!%p25_p4) target bundleno = 4 (0x4), region = 122 }

</bundles_post_ra>
